<compile_context>
chip_gen: v6e
topology: v6e:2x2x1
jax: 0.10.0
libtpu: 0.0.40
codegen_flags: <defaults>
</compile_context>

<pallas_src>
import functools

import jax
import jax.numpy as jnp
from jax.experimental import pallas as pl
from jax.experimental.pallas import tpu as pltpu


def _round_up(x, m):
    return ((x + m - 1) // m) * m


def _pick_tile(n, requested=512):
    """Pick a row-tile size.

    Preferences (in order):
      * small n  -> a single block (rounded to 8 sublanes), no grid overhead
      * tile is a multiple of 256 (fills the 256-wide v6e/v7x MXU M dimension;
        automatically a multiple of 128 for v5e's 4x128 MXUs)
      * tile divides n (no padded copy / sliced writeback in the wrapper)
      * >= 2 grid steps so v7x's second TensorCore gets work
      * tile capped at ~1024 rows so f32 intermediates stay inside the default
        scoped VMEM (16 MiB on v5e)
    Returns (tile_n, n_padded).
    """
    n8 = _round_up(n, 8)
    if n8 <= 256:
        return n8, n8
    cap = max(256, min(_round_up(requested, 256), 1024))
    t = cap
    while t >= 256:
        if n % t == 0 and n // t >= 2:
            return t, n
        t -= 256
    if n8 <= cap:                       # one (possibly padded) block
        return n8, n8
    # TODO(synk): mask the ragged tail in-kernel instead of padding a copy.
    return cap, _round_up(n, cap)


def _layer(z, w, b, d):
    """One highway layer on a row tile: z(f32), w(D,2D) bf16, b(1,2D) f32."""
    lin = jnp.dot(z.astype(jnp.bfloat16), w,
                  preferred_element_type=jnp.float32) + b
    # NOTE: split at column D is lane-tile aligned when D % 128 == 0.
    h = jnp.maximum(lin[:, :d], 0.0)                          # highway gate, ReLU
    # sigmoid via EUP exp + approx reciprocal (frees VALU slots vs. logistic div)
    t = pl.reciprocal(1.0 + jnp.exp(-lin[:, d:]), approx=True)
    # t*h + (1-t)*z  ==  z + t*(h - z)   (one fewer VPU op / live vreg)
    return z + t * (h - z)


def highway_resident_kernel(x_ref, w_ref, b_ref, o_ref, *, num_layers, d):
    """All layers' packed weights resident in VMEM; static loop over layers.

    x_ref : (TILE_N, D)   input rows (any float dtype)
    w_ref : (L, D, 2D)    packed [Wh^T | Wt^T], bf16
    b_ref : (L, 1, 2D)    packed [bh | bt], f32
    o_ref : (TILE_N, D)   output rows
    """
    z = x_ref[...].astype(jnp.float32)
    for i in range(num_layers):          # small, fixed at trace time
        z = _layer(z, w_ref[i], b_ref[i], d)
    o_ref[...] = z.astype(o_ref.dtype)


def highway_stream_kernel(x_ref, w_ref, b_ref, o_ref, z_ref, *, d):
    """One layer's weights streamed per grid step; z carried in VMEM scratch.

    Grid = (row_tiles, layers); layer axis is innermost / "arbitrary".
    """
    layer = pl.program_id(1)

    @pl.when(layer == 0)
    def _():
        z_ref[...] = x_ref[...].astype(jnp.float32)

    z_ref[...] = _layer(z_ref[...], w_ref[0], b_ref[0], d)

    @pl.when(layer == pl.num_programs(1) - 1)
    def _():
        o_ref[...] = z_ref[...].astype(o_ref.dtype)


# Keep all layers' packed weights resident in VMEM while they are small; stream
# one layer per grid step once the slab would crowd VMEM (v7x: 64 MiB physical,
# 32 MiB default scoped).
_RESIDENT_WEIGHT_BYTES = 8 * 1024 * 1024


def highway_forward(tokens, w_packed, b_packed, *, tile_n=512, force_stream=False):
    """tokens: (1, N, D) -> (1, N, D), same dtype.  Matches HighwayNetwork.forward."""
    assert tokens.ndim == 3 and tokens.shape[0] == 1, \
        "HighwayNetwork.forward assumes tokens.shape[0] == 1"
    n, d = tokens.shape[1], tokens.shape[2]
    num_layers = w_packed.shape[0]

    x2d = tokens.reshape((n, d))
    tile_n, n_pad = _pick_tile(n, tile_n)
    if n_pad != n:
        x2d = jnp.pad(x2d, ((0, n_pad - n), (0, 0)))
    n_tiles = n_pad // tile_n

    weight_bytes = w_packed.size * w_packed.dtype.itemsize
    stream = force_stream or weight_bytes > _RESIDENT_WEIGHT_BYTES

    io_bytes = n_pad * d * (x2d.dtype.itemsize + tokens.dtype.itemsize)
    cost = pl.CostEstimate(
        flops=2 * num_layers * n_pad * d * (2 * d),
        transcendentals=num_layers * n_pad * d,
        bytes_accessed=io_bytes + weight_bytes * (n_tiles if stream else 1),
    )

    if not stream:
        kernel = functools.partial(highway_resident_kernel,
                                   num_layers=num_layers, d=d)
        grid_spec = pltpu.PrefetchScalarGridSpec(
            num_scalar_prefetch=0,
            grid=(n_tiles,),
            in_specs=[
                # Row tile of the input: auto double-buffered HBM<->VMEM DMA.
                pl.BlockSpec((tile_n, d), lambda i: (i, 0)),
                # Packed weights/biases: constant index -> VMEM-resident across
                # the grid; single-buffered (never needs a second buffer).
                pl.BlockSpec((num_layers, d, 2 * d), lambda i: (0, 0, 0),
                             pipeline_mode=pl.Buffered(1)),
                pl.BlockSpec((num_layers, 1, 2 * d), lambda i: (0, 0, 0),
                             pipeline_mode=pl.Buffered(1)),
            ],
            out_specs=pl.BlockSpec((tile_n, d), lambda i: (i, 0)),
        )
        dim_sem = ("parallel",)
    else:
        kernel = functools.partial(highway_stream_kernel, d=d)
        grid_spec = pltpu.PrefetchScalarGridSpec(
            num_scalar_prefetch=0,
            grid=(n_tiles, num_layers),
            in_specs=[
                # Input block index ignores the layer axis -> fetched once per
                # row tile; weight/bias slabs stream per layer (double-buffered
                # so layer-(l+1) DMA overlaps layer-l compute).
                pl.BlockSpec((tile_n, d), lambda i, l: (i, 0)),
                pl.BlockSpec((1, d, 2 * d), lambda i, l: (l, 0, 0)),
                pl.BlockSpec((1, 1, 2 * d), lambda i, l: (l, 0, 0)),
            ],
            out_specs=pl.BlockSpec((tile_n, d), lambda i, l: (i, 0)),
            scratch_shapes=[pltpu.VMEM((tile_n, d), jnp.float32)],
        )
        dim_sem = ("parallel", "arbitrary")

    out2d = pl.pallas_call(
        kernel,
        out_shape=jax.ShapeDtypeStruct((n_pad, d), tokens.dtype),
        grid_spec=grid_spec,
        compiler_params=pltpu.CompilerParams(dimension_semantics=dim_sem),
        cost_estimate=cost,
    )(x2d, w_packed, b_packed)

    if n_pad != n:
        out2d = out2d[:n]
    return out2d.reshape(tokens.shape)


def init_params(key, num_layers, input_size):
    """Deterministic init mimicking nn.Linear default (uniform +/- 1/sqrt(in)).

    Returns packed parameters:
      w_packed: (L, D, 2D) bf16, [:, :, :D] = highway W^T, [:, :, D:] = transform W^T
      b_packed: (L, 1, 2D) f32,  [:, :, :D] = highway bias, [:, :, D:] = transform bias
    """
    bound = 1.0 / (input_size ** 0.5)
    keys = jax.random.split(key, num_layers * 4)
    w_list, b_list = [], []
    for i in range(num_layers):
        k_wh, k_bh, k_wt, k_bt = keys[i * 4: i * 4 + 4]
        # PyTorch Linear stores W as (out, in); pre-transpose to (in, out)
        # so the kernel computes z @ W^T.
        w_high = jax.random.uniform(k_wh, (input_size, input_size),
                                    jnp.float32, -bound, bound).T
        b_high = jax.random.uniform(k_bh, (1, input_size),
                                    jnp.float32, -bound, bound)
        w_trans = jax.random.uniform(k_wt, (input_size, input_size),
                                     jnp.float32, -bound, bound).T
        b_trans = jax.random.uniform(k_bt, (1, input_size),
                                     jnp.float32, -bound, bound)
        w_list.append(jnp.concatenate([w_high, w_trans], axis=1))   # (D, 2D)
        b_list.append(jnp.concatenate([b_high, b_trans], axis=1))   # (1, 2D)
    w_packed = jnp.stack(w_list).astype(jnp.bfloat16)               # (L, D, 2D)
    b_packed = jnp.stack(b_list).astype(jnp.float32)                # (L, 1, 2D)
    return w_packed, b_packed


def highway_ref(tokens, w_packed, b_packed):
    """Pure-JAX f32 reference matching the PyTorch module (same packed params)."""
    n, d = tokens.shape[1], tokens.shape[2]
    z = tokens.reshape((n, d)).astype(jnp.float32)
    w = w_packed.astype(jnp.float32)
    b = b_packed.astype(jnp.float32)
    for i in range(w.shape[0]):
        lin = z @ w[i] + b[i]
        h = jnp.maximum(lin[:, :d], 0.0)
        t = jax.nn.sigmoid(lin[:, d:])
        z = t * h + (1.0 - t) * z
    return z.reshape(tokens.shape)      # f32


if __name__ == "__main__":
    LAYERS = 2
    N = 512        # tokens.shape[1]; tile picker -> 2 x 256-row tiles, no padding
    D = 128        # input_size; multiple of 128 -> lane-dense stores, aligned gate split

    key = jax.random.PRNGKey(0)
    k_x, k_p = jax.random.split(key)

    # bf16 activations at the pallas_call edge halve the dominant HBM I/O of
    # this mem-bound kernel; per-layer math still runs in f32 inside the kernel.
    tokens = jax.random.normal(k_x, (1, N, D), dtype=jnp.float32).astype(jnp.bfloat16)
    w_packed, b_packed = init_params(k_p, LAYERS, D)

    ref = highway_ref(tokens, w_packed, b_packed)

    # Default path: weights resident in VMEM, single-buffered.
    out = jax.block_until_ready(highway_forward(tokens, w_packed, b_packed))
    assert out.shape == tokens.shape and out.dtype == tokens.dtype
    # bf16 I/O + bf16 MXU inputs + approx reciprocal -> relaxed tolerance.
    assert jnp.allclose(out.astype(jnp.float32), ref, atol=3e-2, rtol=3e-2), \
        "resident path mismatch vs reference"

    # Layer-streaming path (used automatically when the packed weight slab is
    # too large to keep resident, e.g. big D / many layers on v7x).
    out_s = jax.block_until_ready(
        highway_forward(tokens, w_packed, b_packed, force_stream=True))
    assert jnp.allclose(out_s.astype(jnp.float32), ref, atol=3e-2, rtol=3e-2), \
        "streaming path mismatch vs reference"

    print("KERNEL_OK")
</pallas_src>

<mosaic_0001>
module attributes {stable_mosaic.version = 11 : i64} {
  func.func @highway_resident_kernel(%arg0: i32, %arg1: memref<256x128xbf16, #tpu.memory_space<vmem>>, %arg2: memref<2x128x256xbf16, #tpu.memory_space<vmem>>, %arg3: memref<2x1x256xf32, #tpu.memory_space<vmem>>, %arg4: memref<256x128xbf16, #tpu.memory_space<vmem>>) attributes {dimension_semantics = [#tpu.dimension_semantics<parallel>], iteration_bounds = array<i64: 2>, scalar_prefetch = 0 : i64, scratch_operands = 0 : i64, tpu.core_type = #tpu.core_type<tc>, window_params = [{transform_indices = @transform_0, window_bounds = array<i64: 256, 128>}, {pipeline_mode = #tpu.pipeline_mode<synchronous>, transform_indices = @transform_1, window_bounds = array<i64: 2, 128, 256>}, {pipeline_mode = #tpu.pipeline_mode<synchronous>, transform_indices = @transform_2, window_bounds = array<i64: 2, 1, 256>}, {transform_indices = @transform_3, window_bounds = array<i64: 256, 128>}]} {
    %c0 = arith.constant 0 : index
    %c0_0 = arith.constant 0 : index
    %0 = vector.load %arg1[%c0, %c0_0] : memref<256x128xbf16, #tpu.memory_space<vmem>>, vector<256x128xbf16>
    %1 = arith.extf %0 : vector<256x128xbf16> to vector<256x128xf32>
    %c0_1 = arith.constant 0 : index
    %c0_2 = arith.constant 0 : index
    %c0_3 = arith.constant 0 : index
    %2 = vector.load %arg2[%c0_1, %c0_2, %c0_3] : memref<2x128x256xbf16, #tpu.memory_space<vmem>>, vector<1x128x256xbf16>
    %3 = vector.shape_cast %2 : vector<1x128x256xbf16> to vector<128x256xbf16>
    %c0_4 = arith.constant 0 : index
    %c0_5 = arith.constant 0 : index
    %c0_6 = arith.constant 0 : index
    %4 = vector.load %arg3[%c0_4, %c0_5, %c0_6] : memref<2x1x256xf32, #tpu.memory_space<vmem>>, vector<1x1x256xf32>
    %5 = vector.shape_cast %4 : vector<1x1x256xf32> to vector<1x256xf32>
    %6 = arith.truncf %1 : vector<256x128xf32> to vector<256x128xbf16>
    %cst = arith.constant dense<0.000000e+00> : vector<256x256xf32>
    %7 = tpu.matmul %6, %3, %cst {dimension_numbers = #tpu.dot_dimension_numbers<[1], [0], [0], [1], [0, 0, 1, 1], [], []>} : vector<256x128xbf16>, vector<128x256xbf16>, vector<256x256xf32> -> vector<256x256xf32>
    %8 = vector.broadcast %5 : vector<1x256xf32> to vector<256x256xf32>
    %9 = arith.addf %7, %8 : vector<256x256xf32>
    %10 = vector.extract_strided_slice %9 {offsets = [0, 0], sizes = [256, 128], strides = [1, 1]} : vector<256x256xf32> to vector<256x128xf32>
    %cst_7 = arith.constant 0.000000e+00 : f32
    %11 = vector.broadcast %cst_7 : f32 to vector<256x128xf32>
    %12 = arith.maximumf %10, %11 : vector<256x128xf32>
    %13 = vector.extract_strided_slice %9 {offsets = [0, 128], sizes = [256, 128], strides = [1, 1]} : vector<256x256xf32> to vector<256x128xf32>
    %cst_8 = arith.constant 0.000000e+00 : f32
    %14 = vector.broadcast %cst_8 : f32 to vector<256x128xf32>
    %15 = arith.subf %14, %13 : vector<256x128xf32>
    %16 = math.exp %15 : vector<256x128xf32>
    %cst_9 = arith.constant 1.000000e+00 : f32
    %17 = vector.broadcast %cst_9 : f32 to vector<256x128xf32>
    %18 = arith.addf %17, %16 : vector<256x128xf32>
    %19 = tpu.reciprocal %18 {approx = true} : vector<256x128xf32> -> vector<256x128xf32>
    %20 = arith.subf %12, %1 : vector<256x128xf32>
    %21 = arith.mulf %19, %20 : vector<256x128xf32>
    %22 = arith.addf %1, %21 : vector<256x128xf32>
    %c1 = arith.constant 1 : index
    %c0_10 = arith.constant 0 : index
    %c0_11 = arith.constant 0 : index
    %23 = vector.load %arg2[%c1, %c0_10, %c0_11] : memref<2x128x256xbf16, #tpu.memory_space<vmem>>, vector<1x128x256xbf16>
    %24 = vector.shape_cast %23 : vector<1x128x256xbf16> to vector<128x256xbf16>
    %c1_12 = arith.constant 1 : index
    %c0_13 = arith.constant 0 : index
    %c0_14 = arith.constant 0 : index
    %25 = vector.load %arg3[%c1_12, %c0_13, %c0_14] : memref<2x1x256xf32, #tpu.memory_space<vmem>>, vector<1x1x256xf32>
    %26 = vector.shape_cast %25 : vector<1x1x256xf32> to vector<1x256xf32>
    %27 = arith.truncf %22 : vector<256x128xf32> to vector<256x128xbf16>
    %cst_15 = arith.constant dense<0.000000e+00> : vector<256x256xf32>
    %28 = tpu.matmul %27, %24, %cst_15 {dimension_numbers = #tpu.dot_dimension_numbers<[1], [0], [0], [1], [0, 0, 1, 1], [], []>} : vector<256x128xbf16>, vector<128x256xbf16>, vector<256x256xf32> -> vector<256x256xf32>
    %29 = vector.broadcast %26 : vector<1x256xf32> to vector<256x256xf32>
    %30 = arith.addf %28, %29 : vector<256x256xf32>
    %31 = vector.extract_strided_slice %30 {offsets = [0, 0], sizes = [256, 128], strides = [1, 1]} : vector<256x256xf32> to vector<256x128xf32>
    %cst_16 = arith.constant 0.000000e+00 : f32
    %32 = vector.broadcast %cst_16 : f32 to vector<256x128xf32>
    %33 = arith.maximumf %31, %32 : vector<256x128xf32>
    %34 = vector.extract_strided_slice %30 {offsets = [0, 128], sizes = [256, 128], strides = [1, 1]} : vector<256x256xf32> to vector<256x128xf32>
    %cst_17 = arith.constant 0.000000e+00 : f32
    %35 = vector.broadcast %cst_17 : f32 to vector<256x128xf32>
    %36 = arith.subf %35, %34 : vector<256x128xf32>
    %37 = math.exp %36 : vector<256x128xf32>
    %cst_18 = arith.constant 1.000000e+00 : f32
    %38 = vector.broadcast %cst_18 : f32 to vector<256x128xf32>
    %39 = arith.addf %38, %37 : vector<256x128xf32>
    %40 = tpu.reciprocal %39 {approx = true} : vector<256x128xf32> -> vector<256x128xf32>
    %41 = arith.subf %33, %22 : vector<256x128xf32>
    %42 = arith.mulf %40, %41 : vector<256x128xf32>
    %43 = arith.addf %22, %42 : vector<256x128xf32>
    %44 = arith.truncf %43 : vector<256x128xf32> to vector<256x128xbf16>
    %c0_19 = arith.constant 0 : index
    %c0_20 = arith.constant 0 : index
    %45 = vector.load %arg4[%c0_19, %c0_20] : memref<256x128xbf16, #tpu.memory_space<vmem>>, vector<256x128xbf16>
    tpu.vector_store %arg4[%c0_19, %c0_20], %44 {strides = array<i32>} : memref<256x128xbf16, #tpu.memory_space<vmem>>, vector<256x128xbf16>,
    return
  }
  func.func @transform_0(%arg0: i32) -> (i32, i32) {
    %c0_i32 = arith.constant 0 : i32
    %c0_i32_0 = arith.constant 0 : i32
    return %arg0, %c0_i32 : i32, i32
  }
  func.func @transform_1(%arg0: i32) -> (i32, i32, i32) {
    %c0_i32 = arith.constant 0 : i32
    %c0_i32_0 = arith.constant 0 : i32
    %c0_i32_1 = arith.constant 0 : i32
    %c0_i32_2 = arith.constant 0 : i32
    return %c0_i32, %c0_i32_0, %c0_i32_1 : i32, i32, i32
  }
  func.func @transform_2(%arg0: i32) -> (i32, i32, i32) {
    %c0_i32 = arith.constant 0 : i32
    %c0_i32_0 = arith.constant 0 : i32
    %c0_i32_1 = arith.constant 0 : i32
    %c0_i32_2 = arith.constant 0 : i32
    return %c0_i32, %c0_i32_0, %c0_i32_1 : i32, i32, i32
  }
  func.func @transform_3(%arg0: i32) -> (i32, i32) {
    %c0_i32 = arith.constant 0 : i32
    %c0_i32_0 = arith.constant 0 : i32
    return %arg0, %c0_i32 : i32, i32
  }
}

</mosaic_0001>

<bundles_post_ra>
// kernel: tpu_custom_call.1
= control target key start
LH: loop header
LB: loop body
LE: loop exit
PB: predicated region body
PF: predicated region fallthrough
CT: control target
= control target key end

     0   :  { %8 = vsyncpa [#allocation3], 0  ;;  %s3482_s0 = inlined_call_operand.hbm [shape: bf16[512,128], index: 0, kind: input, shape index: {}]   ;;  %s3483_s1 = inlined_call_operand.hbm [shape: bf16[2,128,256], index: 1, kind: input, shape index: {}]   ;;  %s3484_s2 = inlined_call_operand.hbm [shape: f32[2,1,256], index: 2, kind: input, shape index: {}]   ;;  %s3485_s3 = inlined_call_operand.hbm [shape: bf16[512,128], index: 3, kind: output, shape index: {}]  }
   0x1   :  { %10 = vsyncpa [#allocation3 + $0x1], 0 }
   0x2   :  { %11 = vsyncpa [#allocation6], 0 }
   0x3   :  { %12 = vsyncpa [#allocation4], 0 }
   0x4   :  { %14 = vsyncpa [#allocation4 + $0x1], 0  ;;  %s2669_s12 = smov 0   ;;  %s2671_s13 = smov 0  }
   0x5   :  { %s2673_s14 = smov 0   ;;  %s2675_s15 = smov 0  }
   0x6 LB: > { %s2690_s16 = sadd.s32 4294967295, %s2634_s15   ;;  %s1843_s17 = sadd.s32 4294967294, %s2634_s15   ;;  %s2634_s15 = sphi %s2675_s15, %s3507_s15   ;;  %s2630_s14 = sphi %s2673_s14, %s3506_s14   ;;  %s2626_s13 = sphi %s2671_s13, %s3505_s13   ;;  %s2622_s12 = sphi %s2669_s12, %s3504_s12  }
   0x7   : > { %p40_p0 = scmp.ne.s32.totalorder %s2626_s13, %s2622_s12  ;;  %p3486_p1 = scmp.eq.s32.totalorder %s2690_s16, 0 }
   0x8   : > { %p112_p3 = scmp.eq.s32.totalorder %s1843_s17, 1  ;;  %p1844_p5 = scmp.ge.s32.totalorder %s2634_s15, 1 }
   0x9   : > { %p2699_p4 = por %p3486_p1, %p40_p0  ;;  %p119_p7 = scmp.lt.s32.totalorder %s2634_s15, 3 }
   0xa   : > { %p2704_p6 = por %p112_p3, %p40_p0  ;;  %s2636_s21 = smov [#allocation5]  }
   0xb   : > { %s3490_s18 = scalar_select %p2699_p4, 1, 0 }
   0xc   : > { %s3491_s19 = scalar_select %p2704_p6, 1, 0 }
   0xd   : > { %p2709_p8 = pnand %p1844_p5, %p119_p7  ;;  %s131_s22 = sshll.u32 %s2636_s21, 4  ;;  %s132_s22 = int_to_ptr.vmem [resolvable:$true] %s131_s22 }
   0xe   : > { %s2637_s24 = smov [#allocation7]   ;;  %s2497_s26 = scalar_lea.vmem %s132_s22, 4096 }
   0xf   : > { %s3492_s20 = scalar_select %p2709_p8, 1, 0 }
  0x10   : > { %p2082_p9 = pneg %p2709_p8  ;;  %s144_s25 = sshll.u32 %s2637_s24, 4  ;;  %s145_s25 = int_to_ptr.vmem [resolvable:$true] %s144_s25 }
  0x11   : > { %p2498_p13 = scmp.ne.s32.totalorder %s132_s22, %s2497_s26  ;;  %p2505_p5 = scmp.lt.s32.totalorder %s132_s22, %s132_s22 }
  0x12   : > { %p2718_p11 = pnand %p2082_p9, %p3486_p1  ;;  %p2506_p7 = scmp.lt.s32.totalorder %s2497_s26, %s2497_s26 }
  0x14   : > { %p2488_p12 = pneg %p2718_p11  ;;  %p2507_p10 = por %p2506_p7, %p2505_p5 }
  0x16   : > { %p2500_p0 = pnand %p2498_p13, %p2488_p12 }
  0x18   : > { %p2501_p3 = pneg %p2500_p0 }
  0x1a   : > { %p2508_p9 = pnand %p2507_p10, %p2501_p3 }
  0x1c   : > { %2511 = shalt.err (!%p2508_p9)
}
  0x1d   : > { %s2638_s27 = smov 128   ;;  %s2639_s28 = smov 8  }
  0x1e   : > { %2085 = dma.hbm_to_vmem [thread:$0]  (!%p2718_p11), %s3483_s1, 4096, %s132_s22, [#allocation6], %s2638_s27, %s2638_s27, %s2639_s28  }
  0x1f   : > { %s2523_s4 = scalar_lea.vmem %s145_s25, 64  ;;  %p2531_p2 = scmp.lt.s32.totalorder %s145_s25, %s145_s25 }
  0x20   : > { %p2524_p1 = scmp.ne.s32.totalorder %s145_s25, %s2523_s4  ;;  %p2532_p6 = scmp.lt.s32.totalorder %s2523_s4, %s2523_s4 }
  0x22   : > { %p2526_p13 = pnand %p2524_p1, %p2488_p12  ;;  %p2533_p5 = por %p2532_p6, %p2531_p2 }
  0x24   : > { %p2527_p0 = pneg %p2526_p13 }
  0x26   : > { %p2534_p10 = pnand %p2533_p5, %p2527_p0 }
  0x28   : > { %2537 = shalt.err (!%p2534_p10)
}
  0x29   : > { %s2640_s5 = smov 32   ;;  %s2641_s6 = smov 2  }
  0x2a   : > { %2088 = dma.hbm_to_vmem [thread:$0]  (!%p2718_p11), %s3484_s2, 64, %s145_s25, [#allocation6], %s2640_s5, %s2640_s5, %s2641_s6  }
  0x2b   : > { %s2741_s9 = sadd.s32 1, %s2634_s15   ;;  %s27_s11 = sadd.s32 1, %s2630_s14 }
  0x2c   : > { %s24_s10 = ssub.s32 %s2634_s15, %s2741_s9  ;;  %p34_p2 = scmp.ne.s32.totalorder %s2630_s14, %s2626_s13 }
  0x2d   : > { %p25_p1 = scmp.eq.s32.totalorder %s24_s10, 0  ;;  %p35_p6 = scmp.eq.s32.totalorder %s2634_s15, 0 }
  0x2e   : > { %p3494_p3 = scmp.eq.s32.totalorder %s2690_s16, 1  ;;  %p2099_p9 = scmp.lt.s32.totalorder %s2634_s15, 2 }
  0x2f   : > { %s2750_s17 = scalar_select %p25_p1, %s2630_s14, %s27_s11  }
  0x30   : > { %p36_p12 = por %p35_p6, %p34_p2  ;;  %p2754_p7 = por %p3494_p3, %p34_p2 }
  0x31   : > { %s158_s22 = sand.u32 1, %s2630_s14   ;;  %s1941_s24 = sshll.u32 %s2634_s15, 11 }
  0x32   : > { %s3495_s21 = scalar_select %p2754_p7, 1, 0 }
  0x33   : > { %s1848_s23 = sshll.u32 %s158_s22, 7  ;;  %s2764_s27 = scalar_lea.hbm %s3482_s0, %s1941_s24 }
  0x34   : > { %s162_s28 = scalar_lea.vmem [#allocation2], %s1848_s23  ;;  %p2768_p11 = pnand %p2099_p9, %p36_p12 }
  0x35   : > { %s169_s29 = sshll.u32 %s162_s28, 4  ;;  %s2772_s4 = scalar_lea.sflag [#allocation3], %s158_s22  ;;  %s2766_s29 = int_to_ptr.vmem [resolvable:$true] %s169_s29 }
  0x36   : > { %s2538_s5 = scalar_lea.hbm %s2764_s27, 2048  ;;  %p2540_p0 = pneg %p2768_p11 }
  0x37   : > { %p2539_p13 = scmp.ne.s32.totalorder %s2764_s27, %s2538_s5  ;;  %s2543_s8 = scalar_lea.hbm %s3482_s0, 4096 }
  0x38   : > { %p2544_p1 = scmp.lt.s32.totalorder %s2764_s27, %s3482_s0  ;;  %p2545_p2 = scmp.lt.s32.totalorder %s2543_s8, %s2538_s5 }
  0x39   : > { %p2541_p5 = pnand %p2540_p0, %p2539_p13 }
  0x3a   : > { %p2546_p6 = por %p2545_p2, %p2544_p1 }
  0x3b   : > { %p2542_p10 = pneg %p2541_p5 }
  0x3d   : > { %p2547_p12 = pnand %p2546_p6, %p2542_p10 }
  0x3f   : > { %2550 = shalt.err (!%p2547_p12)
}
  0x40   : > { %s2551_s22 = scalar_lea.vmem %s2766_s29, 2048  ;;  %s2642_s23 = smov [#allocation2]  }
  0x41   : > { %p2552_p3 = scmp.ne.s32.totalorder %s2766_s29, %s2551_s22  ;;  %s2556_s24 = sshll.u32 %s2642_s23, 4  ;;  %s2557_s24 = int_to_ptr.vmem [resolvable:$false] %s2556_s24 }
  0x42   : > { %s2558_s25 = scalar_lea.vmem %s2557_s24, 4096  ;;  %p2559_p5 = scmp.lt.s32.totalorder %s2766_s29, %s2557_s24 }
  0x43   : > { %p2554_p9 = pnand %p2552_p3, %p2540_p0  ;;  %p2560_p7 = scmp.lt.s32.totalorder %s2558_s25, %s2551_s22 }
  0x45   : > { %p2555_p13 = pneg %p2554_p9  ;;  %p2561_p4 = por %p2560_p7, %p2559_p5 }
  0x47   : > { %p2562_p8 = pnand %p2561_p4, %p2555_p13 }
  0x49   : > { %2565 = shalt.err (!%p2562_p8)
}
  0x4a   : > { %s2643_s26 = smov 64   ;;  %s2644_s28 = smov 4  }
  0x4b   : > { %2092 = dma.hbm_to_vmem [thread:$0]  (!%p2768_p11), %s2764_s27, 2048, %s2766_s29, %s2772_s4, %s2643_s26, %s2643_s26, %s2644_s28  }
  0x4c   : > { %p3497_p0 = scmp.ne.s32.totalorder %s3492_s20, 0 }
  0x4d   : > { %s2796_s5 = sand.u32 (!%p3497_p0), 1, %s2626_s13   ;;  %p3498_p4 = scmp.ne.s32.totalorder (!%p3497_p0), %s3490_s18, 0 }
  0x4e   : > { %181 = sbr.rel (%p3497_p0) target bundleno = 738 (0x2e2), region = 32  ;;  %s1852_s6 = sshll.u32 (!%p3497_p0), %s2796_s5, 7 }
  0x4f   : > { %s184_s7 = scalar_lea.sflag (!%p3497_p0), [#allocation3], %s2796_s5  ;;  %s2802_s8 = scalar_lea.vmem (!%p3497_p0), [#allocation2], %s1852_s6 }
  0x53   : > { %2609 = dma.done.wait (%p3498_p4), %s184_s7, 2048  }
  0x54   : > { %2611 = vsyncadd (%p3498_p4), %s184_s7, 4294965248  ;;  %p3499_p8 = scmp.eq.s32.totalorder %s2690_s16, 0 }
  0x56   : > { %2613 = dma.done.wait (%p3499_p8), [#allocation6], 4160   ;;  %p3500_p7 = pmov %p3499_p8 }
  0x57   : > { %v2645_v0 = vmov 0   ;;  %v2146_v1 = vld [vmem:[#allocation5 + $0x74] ss:$8 sps:$4 sm:$0xff]   ;;  %v2148_v2 = vld [vmem:[#allocation5 + $0x70] ss:$8 sps:$4 sm:$0xff]   ;;  %v2815_v17 = vld [vmem:[%s2802_s8] sm:$0xff]   ;;  %v303_v49 = vlaneseq }
  0x58   : > { %2615 = vsyncadd (%p3500_p7), [#allocation6], 4294963136  ;;  %521 = vmatprep.mubr.bf16.mxu0 %v2645_v0  ;;  %1128 = vmatprep.mubr.bf16.mxu1 %v2645_v0  ;;  %v2149_v3 = vld [vmem:[#allocation5 + $0x64] ss:$8 sps:$4 sm:$0xff]   ;;  %v2151_v4 = vld [vmem:[#allocation5 + $0x60] ss:$8 sps:$4 sm:$0xff]  }
  0x59   : > { %489 = vmatprep.subr.bf16.mxu0 %v2146_v1  ;;  %v2152_v5 = vld [vmem:[#allocation5 + $0x54] ss:$8 sps:$4 sm:$0xff]   ;;  %v2154_v6 = vld [vmem:[#allocation5 + $0x50] ss:$8 sps:$4 sm:$0xff]   ;;  %v2155_v7 = vld [vmem:[#allocation5 + $0x44] ss:$8 sps:$4 sm:$0xff]  }
  0x5a   : > { %490 = vmatpush1.bf16.msra.mxu0 %v2148_v2  ;;  %v2157_v8 = vld [vmem:[#allocation5 + $0x40] ss:$8 sps:$4 sm:$0xff]   ;;  %v2158_v9 = vld [vmem:[#allocation5 + $0x34] ss:$8 sps:$4 sm:$0xff]   ;;  %v2160_v10 = vld [vmem:[#allocation5 + $0x30] ss:$8 sps:$4 sm:$0xff]  }
  0x5b   : > { %491 = vmatprep.subr.bf16.mxu0 %v2149_v3  ;;  %v2161_v11 = vld [vmem:[#allocation5 + $0x24] ss:$8 sps:$4 sm:$0xff]   ;;  %v2163_v12 = vld [vmem:[#allocation5 + $0x20] ss:$8 sps:$4 sm:$0xff]   ;;  %v2164_v13 = vld [vmem:[#allocation5 + $0x14] ss:$8 sps:$4 sm:$0xff]  }
  0x5c   : > { %v2166_v14 = vld [vmem:[#allocation5 + $0x10] ss:$8 sps:$4 sm:$0xff]   ;;  %v2167_v15 = vld [vmem:[#allocation5 + $0x4] ss:$8 sps:$4 sm:$0xff]   ;;  %v2169_v16 = vld [vmem:[#allocation5] ss:$8 sps:$4 sm:$0xff]  }
  0x5d   : > { %v2820_v18 = vld [vmem:[%s2802_s8 + $0x8] sm:$0xff]   ;;  %v2825_v19 = vld [vmem:[%s2802_s8 + $0x10] sm:$0xff]   ;;  %v2830_v20 = vld [vmem:[%s2802_s8 + $0x18] sm:$0xff]   ;;  %v2881_v50 = vshrl.u32 %v303_v49, 7  ;;  %s3243_s18 = scalar_lea.vmem [#allocation8], %s1852_s6  ;;  %s1974_s20 = sshll.u32 %s2690_s16, 11 }
  0x5e   : > { %492 = vmatpush1.bf16.msra.mxu0 %v2151_v4  ;;  %v2835_v21 = vld [vmem:[%s2802_s8 + $0x20] sm:$0xff]   ;;  %v2840_v22 = vld [vmem:[%s2802_s8 + $0x28] sm:$0xff]   ;;  %v2845_v23 = vld [vmem:[%s2802_s8 + $0x30] sm:$0xff]   ;;  %s1751_s27 = sshll.u32 %s3243_s18, 4  ;;  %s3436_s4 = scalar_lea.hbm %s3485_s3, %s1974_s20  ;;  %s3438_s27 = int_to_ptr.vmem [resolvable:$true] %s1751_s27 }
  0x5f   : > { %493 = vmatprep.subr.bf16.mxu0 %v2152_v5  ;;  %v2850_v24 = vld [vmem:[%s2802_s8 + $0x38] sm:$0xff]   ;;  %v2855_v25 = vld [vmem:[%s2802_s8 + $0x40] sm:$0xff]   ;;  %v2860_v26 = vld [vmem:[%s2802_s8 + $0x48] sm:$0xff]   ;;  %v309_v51 = vsub.s32 1, %v2881_v50  ;;  %s1738_s10 = scalar_lea.sflag [#allocation4], %s2796_s5  ;;  %s2566_s11 = scalar_lea.vmem %s3438_s27, 2048 }
  0x60   : > { %v2865_v27 = vld [vmem:[%s2802_s8 + $0x50] sm:$0xff]   ;;  %v2870_v29 = vld [vmem:[%s2802_s8 + $0x58] sm:$0xff]   ;;  %v2189_v31 = vld [vmem:[#allocation5 + $0xe4] ss:$8 sps:$4 sm:$0xff]   ;;  %p2567_p11 = scmp.ne.s32.totalorder %s3438_s27, %s2566_s11  ;;  %p3501_p10 = scmp.ne.s32.totalorder %s3495_s21, 0 }
  0x61   : > { %v2186_v28 = vld [vmem:[#allocation5 + $0xf4] ss:$8 sps:$4 sm:$0xff]   ;;  %v2188_v30 = vld [vmem:[#allocation5 + $0xf0] ss:$8 sps:$4 sm:$0xff]   ;;  %v2191_v32 = vld [vmem:[#allocation5 + $0xe0] ss:$8 sps:$4 sm:$0xff]  }
  0x62   : > { %494 = vmatpush1.bf16.msra.mxu0 %v2154_v6  ;;  %1096 = vmatprep.subr.bf16.mxu1 %v2186_v28  ;;  %v2192_v33 = vld [vmem:[#allocation5 + $0xd4] ss:$8 sps:$4 sm:$0xff]   ;;  %v245_v34 = vld [vmem:[%s2802_s8 + $0x60] sm:$0xff]   ;;  %v2194_v35 = vld [vmem:[#allocation5 + $0xd0] ss:$8 sps:$4 sm:$0xff]   ;;  %p2568_p1 = pnand %p2567_p11, %p3501_p10  ;;  %s2646_s16 = smov [#allocation8]  }
  0x63   : > { %495 = vmatprep.subr.bf16.mxu0 %v2155_v7  ;;  %1097 = vmatpush1.bf16.msra.mxu1 %v2188_v30  ;;  %v2195_v36 = vld [vmem:[#allocation5 + $0xc4] ss:$8 sps:$4 sm:$0xff]   ;;  %v2197_v37 = vld [vmem:[#allocation5 + $0xc0] ss:$8 sps:$4 sm:$0xff]   ;;  %v2198_v38 = vld [vmem:[#allocation5 + $0xb4] ss:$8 sps:$4 sm:$0xff]  }
  0x64   : > { %1098 = vmatprep.subr.bf16.mxu1 %v2189_v31  ;;  %v247_v39 = vld [vmem:[%s2802_s8 + $0x68] sm:$0xff]   ;;  %v2200_v40 = vld [vmem:[#allocation5 + $0xb0] ss:$8 sps:$4 sm:$0xff]   ;;  %v2204_v43 = vld [vmem:[#allocation5 + $0x94] ss:$8 sps:$4 sm:$0xff]   ;;  %p2569_p2 = pneg %p2568_p1  ;;  %s2570_s22 = sshll.u32 %s2646_s16, 4  ;;  %s2571_s22 = int_to_ptr.vmem [resolvable:$false] %s2570_s22 }
  0x65   : > { %v2201_v41 = vld [vmem:[#allocation5 + $0xa4] ss:$8 sps:$4 sm:$0xff]   ;;  %v2203_v42 = vld [vmem:[#allocation5 + $0xa0] ss:$8 sps:$4 sm:$0xff]   ;;  %v249_v44 = vld [vmem:[%s2802_s8 + $0x70] sm:$0xff]   ;;  %s2572_s23 = scalar_lea.vmem %s2571_s22, 4096  ;;  %p2573_p6 = scmp.lt.s32.totalorder %s3438_s27, %s2571_s22 }
  0x66   : > { %496 = vmatpush1.bf16.msra.mxu0 %v2157_v8  ;;  %v2206_v45 = vld [vmem:[#allocation5 + $0x90] ss:$8 sps:$4 sm:$0xff]   ;;  %v2207_v46 = vld [vmem:[#allocation5 + $0x84] ss:$8 sps:$4 sm:$0xff]   ;;  %v2209_v47 = vld [vmem:[#allocation5 + $0x80] ss:$8 sps:$4 sm:$0xff]   ;;  %p2574_p12 = scmp.lt.s32.totalorder %s2572_s23, %s2566_s11 }
  0x67   : > { %497 = vmatprep.subr.bf16.mxu0 %v2158_v9  ;;  %1099 = vmatpush1.bf16.msra.mxu1 %v2191_v32  ;;  %v251_v48 = vld [vmem:[%s2802_s8 + $0x78] sm:$0xff]   ;;  %v301_v52 = vld [vmem:[#allocation7] sm:$0x3] }
  0x68   : > { %1100 = vmatprep.subr.bf16.mxu1 %v2192_v33  ;;  %v2886_v53 = vrot.slane %v301_v52, %v309_v51  ;;  %v305_v33 = vsub.s32 0, %v2881_v50  ;;  %p2575_p3 = por %p2574_p12, %p2573_p6 }
  0x6a   : > { %498 = vmatpush1.bf16.msra.mxu0 %v2160_v10  ;;  %p2576_p9 = pnand %p2575_p3, %p2569_p2 }
  0x6b   : > { %499 = vmatprep.subr.bf16.mxu0 %v2161_v11  ;;  %1101 = vmatpush1.bf16.msra.mxu1 %v2194_v35 }
  0x6c   : > { %1102 = vmatprep.subr.bf16.mxu1 %v2195_v36 }
  0x6e   : > { %500 = vmatpush1.bf16.msra.mxu0 %v2163_v12 }
  0x6f   : > { %501 = vmatprep.subr.bf16.mxu0 %v2164_v13  ;;  %1103 = vmatpush1.bf16.msra.mxu1 %v2197_v37 }
  0x70   : > { %1104 = vmatprep.subr.bf16.mxu1 %v2198_v38 }
  0x72   : > { %502 = vmatpush1.bf16.msra.mxu0 %v2166_v14 }
  0x73   : > { %503 = vmatprep.subr.bf16.mxu0 %v2167_v15  ;;  %1105 = vmatpush1.bf16.msra.mxu1 %v2200_v40 }
  0x74   : > { %1106 = vmatprep.subr.bf16.mxu1 %v2201_v41  ;;  %v2908_v41 = vrot.slane %v301_v52, %v305_v33 }
  0x76   : > { %504 = vmatpush1.bf16.msra.mxu0 %v2169_v16 }
  0x77   : > { %1107 = vmatpush1.bf16.msra.mxu1 %v2203_v42 }
  0x78   : > { %1108 = vmatprep.subr.bf16.mxu1 %v2204_v43 }
  0x79   : > { %522 = vmatmul.mubr.bf16.vlgmr.msra.gmra.mxu0 %v2815_v17 }
  0x7a   : > { %531 = vmatprep.mubr.bf16.mxu0 %v2645_v0 }
  0x7b   : > { %1109 = vmatpush1.bf16.msra.mxu1 %v2206_v45 }
  0x7c   : > { %1110 = vmatprep.subr.bf16.mxu1 %v2207_v46 }
  0x7f   : > { %1111 = vmatpush1.bf16.msra.mxu1 %v2209_v47 }
  0x81   : > { %532 = vmatmul.mubr.bf16.gmra.mxu0 %v2820_v18 }
  0x82   : > { %541 = vmatprep.mubr.bf16.mxu0 %v2645_v0 }
  0x89   : > { %542 = vmatmul.mubr.bf16.gmra.mxu0 %v2825_v19 }
  0x8a   : > { %551 = vmatprep.mubr.bf16.mxu0 %v2645_v0 }
  0x91   : > { %552 = vmatmul.mubr.bf16.gmra.mxu0 %v2830_v20 }
  0x92   : > { %561 = vmatprep.mubr.bf16.mxu0 %v2645_v0 }
  0x99   : > { %562 = vmatmul.mubr.bf16.gmra.mxu0 %v2835_v21 }
  0x9a   : > { %571 = vmatprep.mubr.bf16.mxu0 %v2645_v0 }
  0xa1   : > { %572 = vmatmul.mubr.bf16.gmra.mxu0 %v2840_v22 }
  0xa2   : > { %581 = vmatprep.mubr.bf16.mxu0 %v2645_v0 }
  0xa9   : > { %582 = vmatmul.mubr.bf16.gmra.mxu0 %v2845_v23 }
  0xaa   : > { %591 = vmatprep.mubr.bf16.mxu0 %v2645_v0 }
  0xb1   : > { %592 = vmatmul.mubr.bf16.gmra.mxu0 %v2850_v24 }
  0xb2   : > { %601 = vmatprep.mubr.bf16.mxu0 %v2645_v0 }
  0xb9   : > { %602 = vmatmul.mubr.bf16.gmra.mxu0 %v2855_v25 }
  0xba   : > { %611 = vmatprep.mubr.bf16.mxu0 %v2645_v0 }
  0xc1   : > { %612 = vmatmul.mubr.bf16.gmra.mxu0 %v2860_v26 }
  0xc2   : > { %621 = vmatprep.mubr.bf16.mxu0 %v2645_v0 }
  0xc9   : > { %622 = vmatmul.mubr.bf16.gmra.mxu0 %v2865_v27 }
  0xca   : > { %631 = vmatprep.mubr.bf16.mxu0 %v2645_v0 }
  0xd1   : > { %632 = vmatmul.mubr.bf16.gmra.mxu0 %v2870_v29 }
  0xd2   : > { %641 = vmatprep.mubr.bf16.mxu0 %v2645_v0 }
  0xd9   : > { %642 = vmatmul.mubr.bf16.gmra.mxu0 %v245_v34 }
  0xda   : > { %651 = vmatprep.mubr.bf16.mxu0 %v2645_v0 }
  0xe1   : > { %652 = vmatmul.mubr.bf16.gmra.mxu0 %v247_v39 }
  0xe2   : > { %661 = vmatprep.mubr.bf16.mxu0 %v2645_v0 }
  0xe9   : > { %662 = vmatmul.mubr.bf16.gmra.mxu0 %v249_v44 }
  0xea   : > { %671 = vmatprep.mubr.bf16.mxu0 %v2645_v0 }
  0xf1   : > { %672 = vmatmul.mubr.bf16.gmra.mxu0 %v251_v48 }
 0x139   : > { %v523_v54 = vpop.f32.mrf.mxu0 }
 0x13a   : > { %v524_v49 = vadd.f32 %v523_v54, %v2908_v41  ;;  %v254_v54 = vunpack.c.h.bf16 %v2815_v17 }
 0x13b   : > { %v525_v55 = vpop.f32.mrf.mxu0 }
 0x13c   : > { %v526_v56 = vadd.f32 %v525_v55, %v2886_v53 }
 0x13d   : > { %v527_v57 = vpop.f32.mrf.mxu0 }
 0x13e   : > { %v714_v58 = vsub.f32 0.0, %v526_v56  ;;  %v528_v56 = vadd.f32 %v527_v57, %v2908_v41 }
 0x13f   : > { %v529_v59 = vpop.f32.mrf.mxu0 }
 0x140   : > { %v746_v60 = vmul.f32 1.442695, %v714_v58  ;;  %v530_v61 = vadd.f32 %v529_v59, %v2886_v53 }
 0x141   : > { %v2890_v62 = vpop.f32.mrf.mxu0 }
 0x142   : > { %2226 = vpow2.f32 %v746_v60  ;;  %v715_v63 = vsub.f32 0.0, %v530_v61 }
 0x143   : > { %v535_v1 = vpop.f32.mrf.mxu0 }
 0x144   : > { %v748_v2 = vmul.f32 1.442695, %v715_v63  ;;  %v536_v3 = vadd.f32 %v535_v1, %v2886_v53  ;;  %v253_v1 = vunpack.c.l.bf16 %v2815_v17 }
 0x145   : > { %v2893_v4 = vpop.f32.mrf.mxu0 }
 0x146   : > { %2228 = vpow2.f32 %v748_v2  ;;  %v716_v5 = vsub.f32 0.0, %v536_v3  ;;  %v682_v2 = vmax.f32 %v524_v49, 0.0  ;;  %v538_v17 = vadd.f32 %v2893_v4, %v2908_v41 }
 0x147   : > { %v539_v6 = vpop.f32.mrf.mxu0 }
 0x148   : > { %v750_v7 = vmul.f32 1.442695, %v716_v5  ;;  %v540_v8 = vadd.f32 %v539_v6, %v2886_v53  ;;  %v683_v5 = vmax.f32 %v528_v56, 0.0  ;;  %v685_v4 = vmax.f32 %v538_v17, 0.0 }
 0x149   : > { %v2896_v9 = vpop.f32.mrf.mxu0  ;;  %v258_v17 = vunpack.c.h.bf16 %v2825_v19 }
 0x14a   : > { %2230 = vpow2.f32 %v750_v7  ;;  %v717_v10 = vsub.f32 0.0, %v540_v8 }
 0x14b   : > { %v545_v11 = vpop.f32.mrf.mxu0 }
 0x14c   : > { %v752_v12 = vmul.f32 1.442695, %v717_v10  ;;  %v546_v13 = vadd.f32 %v545_v11, %v2886_v53 }
 0x14d   : > { %v2899_v14 = vpop.f32.mrf.mxu0 }
 0x14e   : > { %2232 = vpow2.f32 %v752_v12  ;;  %v718_v15 = vsub.f32 0.0, %v546_v13  ;;  %v874_v12 = vsub.f32 %v682_v2, %v253_v1  ;;  %v534_v13 = vadd.f32 %v2890_v62, %v2908_v41 }
 0x14f   : > { %v2227_v16 = vpop.eup %2226  ;;  %v549_v28 = vpop.f32.mrf.mxu0  ;;  %v255_v62 = vunpack.c.l.bf16 %v2820_v18 }
 0x150   : > { %v810_v30 = vadd.f32 1.0, %v2227_v16  ;;  %v754_v31 = vmul.f32 1.442695, %v718_v15  ;;  %v550_v32 = vadd.f32 %v549_v28, %v2886_v53  ;;  %v875_v28 = vsub.f32 %v683_v5, %v254_v54 }
 0x151   : > { %v2903_v34 = vpop.f32.mrf.mxu0 }
 0x152   : > { %2234 = vrcp.f32 %v810_v30  ;;  %v719_v35 = vsub.f32 0.0, %v550_v32 }
 0x153   : > { %v2229_v36 = vpop.eup %2228  ;;  %2236 = vpow2.f32 %v754_v31  ;;  %v555_v37 = vpop.f32.mrf.mxu0 }
 0x154   : > { %v811_v38 = vadd.f32 1.0, %v2229_v36  ;;  %v756_v39 = vmul.f32 1.442695, %v719_v35  ;;  %v556_v40 = vadd.f32 %v555_v37, %v2886_v53 }
 0x155   : > { %v2910_v42 = vpop.f32.mrf.mxu0 }
 0x156   : > { %2238 = vrcp.f32 %v811_v38  ;;  %v720_v43 = vsub.f32 0.0, %v556_v40  ;;  %v684_v40 = vmax.f32 %v534_v13, 0.0 }
 0x157   : > { %v2231_v44 = vpop.eup %2230  ;;  %2240 = vpow2.f32 %v756_v39  ;;  %v559_v45 = vpop.f32.mrf.mxu0 }
 0x158   : > { %v812_v46 = vadd.f32 1.0, %v2231_v44  ;;  %v758_v47 = vmul.f32 1.442695, %v720_v43  ;;  %v560_v48 = vadd.f32 %v559_v45, %v2886_v53  ;;  %v256_v45 = vunpack.c.h.bf16 %v2820_v18 }
 0x159   : > { %v2914_v55 = vpop.f32.mrf.mxu0 }
 0x15a   : > { %2242 = vrcp.f32 %v812_v46  ;;  %v721_v52 = vsub.f32 0.0, %v560_v48  ;;  %v877_v5 = vsub.f32 %v685_v4, %v256_v45  ;;  %v554_v4 = vadd.f32 %v2903_v34, %v2908_v41 }
 0x15b   : > { %v2233_v58 = vpop.eup %2232  ;;  %2244 = vpow2.f32 %v758_v47  ;;  %v565_v59 = vpop.f32.mrf.mxu0 }
 0x15c   : > { %v813_v60 = vadd.f32 1.0, %v2233_v58  ;;  %v760_v61 = vmul.f32 1.442695, %v721_v52  ;;  %v566_v63 = vadd.f32 %v565_v59, %v2886_v53 }
 0x15d   : > { %v2919_v3 = vpop.f32.mrf.mxu0 }
 0x15e   : > { %2246 = vrcp.f32 %v813_v60  ;;  %v722_v6 = vsub.f32 0.0, %v566_v63  ;;  %v876_v60 = vsub.f32 %v684_v40, %v255_v62 }
 0x15f   : > { %v2235_v57 = vpop.eup %2234  ;;  %2248 = vpow2.f32 %v760_v61  ;;  %v569_v7 = vpop.f32.mrf.mxu0  ;;  %v544_v61 = vadd.f32 %v2896_v9, %v2908_v41 }
 0x160   : > { %v2237_v8 = vpop.eup %2236  ;;  %v762_v10 = vmul.f32 1.442695, %v722_v6  ;;  %v570_v11 = vadd.f32 %v569_v7, %v2886_v53  ;;  %v906_v35 = vmul.f32 %v2235_v57, %v874_v12  ;;  %v257_v12 = vunpack.c.l.bf16 %v2825_v19 }
 0x161   : > { %v814_v15 = vadd.f32 1.0, %v2237_v8  ;;  %v2925_v16 = vpop.f32.mrf.mxu0  ;;  %v686_v13 = vmax.f32 %v544_v61, 0.0 }
 0x162   : > { %2250 = vpow2.f32 %v762_v10  ;;  %v723_v30 = vsub.f32 0.0, %v570_v11  ;;  %v2934_v49 = vadd.f32 %v906_v35, %v253_v1 }
 0x163   : > { %v2239_v31 = vpop.eup %2238  ;;  %2252 = vrcp.f32 %v814_v15  ;;  %v575_v32 = vpop.f32.mrf.mxu0 }
 0x164   : > { %v2241_v36 = vpop.eup %2240  ;;  %v764_v37 = vmul.f32 1.442695, %v723_v30  ;;  %v576_v38 = vadd.f32 %v575_v32, %v2886_v53  ;;  %v907_v39 = vmul.f32 %v2239_v31, %v875_v28 }
 0x165   : > { %v815_v43 = vadd.f32 1.0, %v2241_v36  ;;  %v2931_v44 = vpop.f32.mrf.mxu0 }
 0x166   : > { %2254 = vpow2.f32 %v764_v37  ;;  %v724_v46 = vsub.f32 0.0, %v576_v38  ;;  %v2936_v56 = vadd.f32 %v907_v39, %v254_v54  ;;  %v548_v54 = vadd.f32 %v2899_v14, %v2908_v41 }
 0x167   : > { %v2243_v47 = vpop.eup %2242  ;;  %2256 = vrcp.f32 %v815_v43  ;;  %v579_v48 = vpop.f32.mrf.mxu0  ;;  %v878_v43 = vsub.f32 %v686_v13, %v257_v12 }
 0x168   : > { %v2245_v52 = vpop.eup %2244  ;;  %v766_v58 = vmul.f32 1.442695, %v724_v46  ;;  %v580_v59 = vadd.f32 %v579_v48, %v2886_v53  ;;  %v989_v2 = vpack.c.bf16 %v2936_v56, %v2934_v49  ;;  %v908_v7 = vmul.f32 %v2243_v47, %v876_v60 }
 0x169   : > { %v816_v63 = vadd.f32 1.0, %v2245_v52  ;;  %v2941_v18 = vpop.f32.mrf.mxu0  ;;  %v687_v31 = vmax.f32 %v548_v54, 0.0 }
 0x16a   : > { %2258 = vpow2.f32 %v766_v58  ;;  %v725_v1 = vsub.f32 0.0, %v580_v59  ;;  %1129 = vmatmul.mubr.bf16.vlgmr.msra.gmra.mxu1 %v989_v2  ;;  %v2953_v35 = vadd.f32 %v908_v7, %v255_v62  ;;  %v688_v2 = vmax.f32 %v554_v4, 0.0 }
 0x16b   : > { %v2247_v6 = vpop.eup %2246  ;;  %2260 = vrcp.f32 %v816_v63  ;;  %v585_v57 = vpop.f32.mrf.mxu0  ;;  %1138 = vmatprep.mubr.bf16.mxu1 %v2645_v0  ;;  %v879_v48 = vsub.f32 %v687_v31, %v258_v17  ;;  %v259_v63 = vunpack.c.l.bf16 %v2830_v20 }
 0x16c   : > { %v2249_v8 = vpop.eup %2248  ;;  %v768_v10 = vmul.f32 1.442695, %v725_v1  ;;  %v586_v9 = vadd.f32 %v585_v57, %v2886_v53  ;;  %v909_v11 = vmul.f32 %v2247_v6, %v877_v5  ;;  %v260_v6 = vunpack.c.h.bf16 %v2830_v20 }
 0x16d   : > { %v817_v15 = vadd.f32 1.0, %v2249_v8  ;;  %v2950_v28 = vpop.f32.mrf.mxu0 }
 0x16e   : > { %2262 = vpow2.f32 %v768_v10  ;;  %v726_v14 = vsub.f32 0.0, %v586_v9  ;;  %v2955_v36 = vadd.f32 %v909_v11, %v256_v45  ;;  %v558_v45 = vadd.f32 %v2910_v42, %v2908_v41 }
 0x16f   : > { %v2251_v30 = vpop.eup %2250  ;;  %2264 = vrcp.f32 %v817_v15  ;;  %v589_v32 = vpop.f32.mrf.mxu0 }
 0x170   : > { %v2253_v37 = vpop.eup %2252  ;;  %v818_v38 = vadd.f32 1.0, %v2251_v30  ;;  %v770_v39 = vmul.f32 1.442695, %v726_v14  ;;  %v590_v40 = vadd.f32 %v589_v32, %v2886_v53  ;;  %v990_v46 = vpack.c.bf16 %v2955_v36, %v2953_v35 }
 0x171   : > { %v2960_v19 = vpop.f32.mrf.mxu0  ;;  %v910_v58 = vmul.f32 %v2253_v37, %v878_v43  ;;  %v689_v57 = vmax.f32 %v558_v45, 0.0  ;;  %v880_v14 = vsub.f32 %v688_v2, %v259_v63  ;;  %v564_v30 = vadd.f32 %v2914_v55, %v2908_v41 }
 0x172   : > { %2266 = vrcp.f32 %v818_v38  ;;  %v727_v47 = vsub.f32 0.0, %v590_v40  ;;  %1139 = vmatmul.mubr.bf16.gmra.mxu1 %v990_v46  ;;  %v261_v46 = vunpack.c.l.bf16 %v2835_v21 }
 0x173   : > { %v2255_v62 = vpop.eup %2254  ;;  %2268 = vpow2.f32 %v770_v39  ;;  %v595_v52 = vpop.f32.mrf.mxu0  ;;  %1148 = vmatprep.mubr.bf16.mxu1 %v2645_v0  ;;  %v2972_v8 = vadd.f32 %v910_v58, %v257_v12  ;;  %v568_v12 = vadd.f32 %v2919_v3, %v2908_v41  ;;  %v881_v37 = vsub.f32 %v689_v57, %v260_v6 }
 0x174   : > { %v2257_v59 = vpop.eup %2256  ;;  %v819_v60 = vadd.f32 1.0, %v2255_v62  ;;  %v772_v61 = vmul.f32 1.442695, %v727_v47  ;;  %v596_v34 = vadd.f32 %v595_v52, %v2886_v53  ;;  %v690_v47 = vmax.f32 %v564_v30, 0.0 }
 0x175   : > { %v2969_v5 = vpop.f32.mrf.mxu0  ;;  %v911_v1 = vmul.f32 %v2257_v59, %v879_v48  ;;  %v262_v48 = vunpack.c.h.bf16 %v2835_v21  ;;  %v691_v45 = vmax.f32 %v568_v12, 0.0  ;;  %v263_v12 = vunpack.c.l.bf16 %v2840_v22 }
 0x176   : > { %2270 = vrcp.f32 %v819_v60  ;;  %v728_v42 = vsub.f32 0.0, %v596_v34 }
 0x177   : > { %v2259_v54 = vpop.eup %2258  ;;  %2272 = vpow2.f32 %v772_v61  ;;  %v599_v7 = vpop.f32.mrf.mxu0  ;;  %v2974_v10 = vadd.f32 %v911_v1, %v258_v17 }
 0x178   : > { %v2261_v9 = vpop.eup %2260  ;;  %v820_v11 = vadd.f32 1.0, %v2259_v54  ;;  %v774_v13 = vmul.f32 1.442695, %v728_v42  ;;  %v600_v15 = vadd.f32 %v599_v7, %v2886_v53  ;;  %v882_v42 = vsub.f32 %v690_v47, %v261_v46 }
 0x179   : > { %v2979_v20 = vpop.f32.mrf.mxu0  ;;  %v991_v31 = vpack.c.bf16 %v2974_v10, %v2972_v8  ;;  %v912_v39 = vmul.f32 %v2261_v9, %v880_v14  ;;  %v574_v54 = vadd.f32 %v2925_v16, %v2908_v41  ;;  %v883_v9 = vsub.f32 %v691_v45, %v262_v48 }
 0x17a   : > { %2274 = vrcp.f32 %v820_v11  ;;  %v729_v17 = vsub.f32 0.0, %v600_v15 }
 0x17b   : > { %v2263_v32 = vpop.eup %2262  ;;  %2276 = vpow2.f32 %v774_v13  ;;  %1149 = vmatmul.mubr.bf16.gmra.mxu1 %v991_v31  ;;  %v605_v38 = vpop.f32.mrf.mxu0  ;;  %v2991_v60 = vadd.f32 %v912_v39, %v259_v63  ;;  %v578_v63 = vadd.f32 %v2931_v44, %v2908_v41  ;;  %v264_v44 = vunpack.c.h.bf16 %v2840_v22 }
 0x17c   : > { %v2265_v40 = vpop.eup %2264  ;;  %v821_v43 = vadd.f32 1.0, %v2263_v32  ;;  %v776_v4 = vmul.f32 1.442695, %v729_v17  ;;  %v606_v55 = vadd.f32 %v605_v38, %v2886_v53  ;;  %1158 = vmatprep.mubr.bf16.mxu1 %v2645_v0  ;;  %v692_v17 = vmax.f32 %v574_v54, 0.0 }
 0x17d   : > { %v2988_v62 = vpop.f32.mrf.mxu0  ;;  %v913_v3 = vmul.f32 %v2265_v40, %v881_v37  ;;  %v693_v38 = vmax.f32 %v578_v63, 0.0  ;;  %v265_v63 = vunpack.c.l.bf16 %v2845_v23 }
 0x17e   : > { %2278 = vrcp.f32 %v821_v43  ;;  %v730_v52 = vsub.f32 0.0, %v606_v55 }
 0x17f   : > { %v2267_v58 = vpop.eup %2266  ;;  %2280 = vpow2.f32 %v776_v4  ;;  %v609_v59 = vpop.f32.mrf.mxu0  ;;  %v2993_v61 = vadd.f32 %v913_v3, %v260_v6 }
 0x180   : > { %v2269_v34 = vpop.eup %2268  ;;  %v778_v2 = vmul.f32 1.442695, %v730_v52  ;;  %v610_v1 = vadd.f32 %v609_v59, %v2886_v53  ;;  %v914_v15 = vmul.f32 %v2267_v58, %v882_v42  ;;  %v884_v52 = vsub.f32 %v692_v17, %v263_v12 }
 0x181   : > { %v822_v57 = vadd.f32 1.0, %v2269_v34  ;;  %v2998_v21 = vpop.f32.mrf.mxu0  ;;  %v992_v7 = vpack.c.bf16 %v2993_v61, %v2991_v60  ;;  %v584_v58 = vadd.f32 %v2941_v18, %v2908_v41 }
 0x182   : > { %2282 = vpow2.f32 %v778_v2  ;;  %v731_v6 = vsub.f32 0.0, %v610_v1  ;;  %v3010_v4 = vadd.f32 %v914_v15, %v261_v46  ;;  %v885_v2 = vsub.f32 %v693_v38, %v264_v44 }
 0x183   : > { %v2271_v11 = vpop.eup %2270  ;;  %2284 = vrcp.f32 %v822_v57  ;;  %1159 = vmatmul.mubr.bf16.gmra.mxu1 %v992_v7  ;;  %v615_v13 = vpop.f32.mrf.mxu0  ;;  %v266_v15 = vunpack.c.h.bf16 %v2845_v23 }
 0x184   : > { %v2273_v14 = vpop.eup %2272  ;;  %v780_v30 = vmul.f32 1.442695, %v731_v6  ;;  %v616_v16 = vadd.f32 %v615_v13, %v2886_v53  ;;  %1168 = vmatprep.mubr.bf16.mxu1 %v2645_v0  ;;  %v915_v31 = vmul.f32 %v2271_v11, %v883_v9  ;;  %v694_v6 = vmax.f32 %v584_v58, 0.0 }
 0x185   : > { %v823_v32 = vadd.f32 1.0, %v2273_v14  ;;  %v3007_v37 = vpop.f32.mrf.mxu0 }
 0x186   : > { %2286 = vpow2.f32 %v780_v30  ;;  %v732_v39 = vsub.f32 0.0, %v616_v16  ;;  %v3012_v55 = vadd.f32 %v915_v31, %v262_v48  ;;  %v588_v48 = vadd.f32 %v2950_v28, %v2908_v41 }
 0x187   : > { %v2275_v40 = vpop.eup %2274  ;;  %2288 = vrcp.f32 %v823_v32  ;;  %v619_v43 = vpop.f32.mrf.mxu0 }
 0x188   : > { %v2277_v47 = vpop.eup %2276  ;;  %v782_v3 = vmul.f32 1.442695, %v732_v39  ;;  %v620_v45 = vadd.f32 %v619_v43, %v2886_v53  ;;  %v993_v34 = vpack.c.bf16 %v3012_v55, %v3010_v4  ;;  %v916_v54 = vmul.f32 %v2275_v40, %v884_v52 }
 0x189   : > { %v824_v59 = vadd.f32 1.0, %v2277_v47  ;;  %v3017_v22 = vpop.f32.mrf.mxu0  ;;  %v695_v30 = vmax.f32 %v588_v48, 0.0  ;;  %v886_v43 = vsub.f32 %v694_v6, %v265_v63  ;;  %v594_v47 = vadd.f32 %v2960_v19, %v2908_v41 }
 0x18a   : > { %2290 = vpow2.f32 %v782_v3  ;;  %v733_v46 = vsub.f32 0.0, %v620_v45  ;;  %v3029_v31 = vadd.f32 %v916_v54, %v263_v12 }
 0x18b   : > { %v2279_v1 = vpop.eup %2278  ;;  %2292 = vrcp.f32 %v824_v59  ;;  %1169 = vmatmul.mubr.bf16.gmra.mxu1 %v993_v34  ;;  %v625_v42 = vpop.f32.mrf.mxu0  ;;  %v887_v52 = vsub.f32 %v695_v30, %v266_v15  ;;  %v696_v48 = vmax.f32 %v594_v47, 0.0 }
 0x18c   : > { %v2281_v57 = vpop.eup %2280  ;;  %v784_v7 = vmul.f32 1.442695, %v733_v46  ;;  %v626_v18 = vadd.f32 %v625_v42, %v2886_v53  ;;  %1178 = vmatprep.mubr.bf16.mxu1 %v2645_v0  ;;  %v917_v9 = vmul.f32 %v2279_v1, %v885_v2  ;;  %v267_v1 = vunpack.c.l.bf16 %v2850_v24 }
 0x18d   : > { %v825_v11 = vadd.f32 1.0, %v2281_v57  ;;  %v3026_v13 = vpop.f32.mrf.mxu0  ;;  %v268_v57 = vunpack.c.h.bf16 %v2850_v24 }
 0x18e   : > { %2294 = vpow2.f32 %v784_v7  ;;  %v734_v28 = vsub.f32 0.0, %v626_v18  ;;  %v3031_v17 = vadd.f32 %v917_v9, %v264_v44  ;;  %v598_v44 = vadd.f32 %v2969_v5, %v2908_v41 }
 0x18f   : > { %v2283_v14 = vpop.eup %2282  ;;  %2296 = vrcp.f32 %v825_v11  ;;  %v629_v16 = vpop.f32.mrf.mxu0 }
 0x190   : > { %v2285_v32 = vpop.eup %2284  ;;  %v826_v38 = vadd.f32 1.0, %v2283_v14  ;;  %v786_v39 = vmul.f32 1.442695, %v734_v28  ;;  %v630_v40 = vadd.f32 %v629_v16, %v2886_v53  ;;  %v994_v3 = vpack.c.bf16 %v3031_v17, %v3029_v31 }
 0x191   : > { %v3036_v23 = vpop.f32.mrf.mxu0  ;;  %v918_v59 = vmul.f32 %v2285_v32, %v886_v43  ;;  %v697_v18 = vmax.f32 %v598_v44, 0.0  ;;  %v888_v32 = vsub.f32 %v696_v48, %v267_v1  ;;  %v269_v44 = vunpack.c.l.bf16 %v2855_v25 }
 0x192   : > { %2298 = vrcp.f32 %v826_v38  ;;  %v735_v45 = vsub.f32 0.0, %v630_v40  ;;  %v604_v38 = vadd.f32 %v2979_v20, %v2908_v41 }
 0x193   : > { %v2287_v12 = vpop.eup %2286  ;;  %2300 = vpow2.f32 %v786_v39  ;;  %1179 = vmatmul.mubr.bf16.gmra.mxu1 %v994_v3  ;;  %v635_v58 = vpop.f32.mrf.mxu0  ;;  %v3048_v6 = vadd.f32 %v918_v59, %v265_v63  ;;  %v608_v63 = vadd.f32 %v2988_v62, %v2908_v41  ;;  %v889_v43 = vsub.f32 %v697_v18, %v268_v57 }
 0x194   : > { %v2289_v34 = vpop.eup %2288  ;;  %v827_v2 = vadd.f32 1.0, %v2287_v12  ;;  %v788_v46 = vmul.f32 1.442695, %v735_v45  ;;  %v636_v19 = vadd.f32 %v635_v58, %v2886_v53  ;;  %1188 = vmatprep.mubr.bf16.mxu1 %v2645_v0  ;;  %v698_v58 = vmax.f32 %v604_v38, 0.0 }
 0x195   : > { %v3045_v42 = vpop.f32.mrf.mxu0  ;;  %v919_v54 = vmul.f32 %v2289_v34, %v887_v52  ;;  %v270_v34 = vunpack.c.h.bf16 %v2855_v25 }
 0x196   : > { %2302 = vrcp.f32 %v827_v2  ;;  %v736_v5 = vsub.f32 0.0, %v636_v19  ;;  %v699_v2 = vmax.f32 %v608_v63, 0.0 }
 0x197   : > { %v2291_v7 = vpop.eup %2290  ;;  %2304 = vpow2.f32 %v788_v46  ;;  %v639_v9 = vpop.f32.mrf.mxu0  ;;  %v3050_v11 = vadd.f32 %v919_v54, %v266_v15 }
 0x198   : > { %v2293_v28 = vpop.eup %2292  ;;  %v828_v14 = vadd.f32 1.0, %v2291_v7  ;;  %v790_v30 = vmul.f32 1.442695, %v736_v5  ;;  %v640_v16 = vadd.f32 %v639_v9, %v2886_v53 }
 0x199   : > { %v3055_v24 = vpop.f32.mrf.mxu0  ;;  %v995_v39 = vpack.c.bf16 %v3050_v11, %v3048_v6  ;;  %v920_v3 = vmul.f32 %v2293_v28, %v888_v32  ;;  %v890_v28 = vsub.f32 %v698_v58, %v269_v44  ;;  %v891_v32 = vsub.f32 %v699_v2, %v270_v34 }
 0x19a   : > { %2306 = vrcp.f32 %v828_v14  ;;  %v737_v15 = vsub.f32 0.0, %v640_v16  ;;  %v614_v14 = vadd.f32 %v2998_v21, %v2908_v41 }
 0x19b   : > { %v2295_v40 = vpop.eup %2294  ;;  %2308 = vpow2.f32 %v790_v30  ;;  %1189 = vmatmul.mubr.bf16.gmra.mxu1 %v995_v39  ;;  %v645_v47 = vpop.f32.mrf.mxu0  ;;  %v3067_v54 = vadd.f32 %v920_v3, %v267_v1  ;;  %v618_v1 = vadd.f32 %v3007_v37, %v2908_v41  ;;  %v272_v37 = vunpack.c.h.bf16 %v2860_v26 }
 0x19c   : > { %v2297_v45 = vpop.eup %2296  ;;  %v829_v12 = vadd.f32 1.0, %v2295_v40  ;;  %v792_v52 = vmul.f32 1.442695, %v737_v15  ;;  %v646_v20 = vadd.f32 %v645_v47, %v2886_v53  ;;  %1198 = vmatprep.mubr.bf16.mxu1 %v2645_v0  ;;  %v271_v47 = vunpack.c.l.bf16 %v2860_v26 }
 0x19d   : > { %v3064_v59 = vpop.f32.mrf.mxu0  ;;  %v921_v62 = vmul.f32 %v2297_v45, %v889_v43  ;;  %v700_v3 = vmax.f32 %v614_v14, 0.0 }
 0x19e   : > { %2310 = vrcp.f32 %v829_v12  ;;  %v738_v46 = vsub.f32 0.0, %v646_v20 }
 0x19f   : > { %v2299_v19 = vpop.eup %2298  ;;  %2312 = vpow2.f32 %v792_v52  ;;  %v649_v48 = vpop.f32.mrf.mxu0  ;;  %v3069_v5 = vadd.f32 %v921_v62, %v268_v57  ;;  %v701_v52 = vmax.f32 %v618_v1, 0.0 }
 0x1a0   : > { %v2301_v7 = vpop.eup %2300  ;;  %v794_v18 = vmul.f32 1.442695, %v738_v46  ;;  %v650_v9 = vadd.f32 %v649_v48, %v2886_v53  ;;  %v922_v63 = vmul.f32 %v2299_v19, %v890_v28 }
 0x1a1   : > { %v830_v30 = vadd.f32 1.0, %v2301_v7  ;;  %v3074_v25 = vpop.f32.mrf.mxu0  ;;  %v996_v16 = vpack.c.bf16 %v3069_v5, %v3067_v54 }
 0x1a2   : > { %2314 = vpow2.f32 %v794_v18  ;;  %v739_v57 = vsub.f32 0.0, %v650_v9  ;;  %v3086_v2 = vadd.f32 %v922_v63, %v269_v44  ;;  %v892_v18 = vsub.f32 %v700_v3, %v271_v47 }
 0x1a3   : > { %v2303_v38 = vpop.eup %2302  ;;  %2316 = vrcp.f32 %v830_v30  ;;  %1199 = vmatmul.mubr.bf16.gmra.mxu1 %v996_v16  ;;  %v655_v39 = vpop.f32.mrf.mxu0  ;;  %v624_v9 = vadd.f32 %v3017_v22, %v2908_v41  ;;  %v893_v30 = vsub.f32 %v701_v52, %v272_v37  ;;  %v273_v63 = vunpack.c.l.bf16 %v2865_v27 }
 0x1a4   : > { %v2305_v15 = vpop.eup %2304  ;;  %v796_v40 = vmul.f32 1.442695, %v739_v57  ;;  %v656_v21 = vadd.f32 %v655_v39, %v2886_v53  ;;  %1208 = vmatprep.mubr.bf16.mxu1 %v2645_v0  ;;  %v923_v43 = vmul.f32 %v2303_v38, %v891_v32 }
 0x1a5   : > { %v831_v45 = vadd.f32 1.0, %v2305_v15  ;;  %v3083_v12 = vpop.f32.mrf.mxu0  ;;  %v702_v15 = vmax.f32 %v624_v9, 0.0  ;;  %v634_v9 = vadd.f32 %v3036_v23, %v2908_v41 }
 0x1a6   : > { %2318 = vpow2.f32 %v796_v40  ;;  %v740_v20 = vsub.f32 0.0, %v656_v21  ;;  %v3088_v46 = vadd.f32 %v923_v43, %v270_v34  ;;  %v628_v34 = vadd.f32 %v3026_v13, %v2908_v41 }
 0x1a7   : > { %v2307_v58 = vpop.eup %2306  ;;  %2320 = vrcp.f32 %v831_v45  ;;  %v659_v62 = vpop.f32.mrf.mxu0  ;;  %v274_v43 = vunpack.c.h.bf16 %v2865_v27 }
 0x1a8   : > { %v2309_v19 = vpop.eup %2308  ;;  %v798_v48 = vmul.f32 1.442695, %v740_v20  ;;  %v660_v7 = vadd.f32 %v659_v62, %v2886_v53  ;;  %v997_v14 = vpack.c.bf16 %v3088_v46, %v3086_v2  ;;  %v924_v1 = vmul.f32 %v2307_v58, %v892_v18 }
 0x1a9   : > { %v832_v28 = vadd.f32 1.0, %v2309_v19  ;;  %v3093_v26 = vpop.f32.mrf.mxu0  ;;  %v703_v45 = vmax.f32 %v628_v34, 0.0  ;;  %v894_v18 = vsub.f32 %v702_v15, %v273_v63  ;;  %v276_v15 = vunpack.c.h.bf16 %v2870_v29 }
 0x1aa   : > { %2322 = vpow2.f32 %v798_v48  ;;  %v741_v44 = vsub.f32 0.0, %v660_v7  ;;  %v3105_v20 = vadd.f32 %v924_v1, %v271_v47 }
 0x1ab   : > { %v2311_v16 = vpop.eup %2310  ;;  %2324 = vrcp.f32 %v832_v28  ;;  %1209 = vmatmul.mubr.bf16.gmra.mxu1 %v997_v14  ;;  %v665_v32 = vpop.f32.mrf.mxu0 }
 0x1ac   : > { %v2313_v57 = vpop.eup %2312  ;;  %v800_v38 = vmul.f32 1.442695, %v741_v44  ;;  %v666_v22 = vadd.f32 %v665_v32, %v2886_v53  ;;  %1218 = vmatprep.mubr.bf16.mxu1 %v2645_v0  ;;  %v925_v39 = vmul.f32 %v2311_v16, %v893_v30  ;;  %v895_v30 = vsub.f32 %v703_v45, %v274_v43 }
 0x1ad   : > { %v833_v40 = vadd.f32 1.0, %v2313_v57  ;;  %v3102_v21 = vpop.f32.mrf.mxu0  ;;  %v275_v57 = vunpack.c.l.bf16 %v2870_v29 }
 0x1ae   : > { %2326 = vpow2.f32 %v800_v38  ;;  %v742_v13 = vsub.f32 0.0, %v666_v22  ;;  %v3107_v58 = vadd.f32 %v925_v39, %v272_v37  ;;  %v638_v37 = vadd.f32 %v3045_v42, %v2908_v41 }
 0x1af   : > { %v2315_v3 = vpop.eup %2314  ;;  %2328 = vrcp.f32 %v833_v40  ;;  %v669_v52 = vpop.f32.mrf.mxu0  ;;  %v704_v38 = vmax.f32 %v634_v9, 0.0 }
 0x1b0   : > { %v2317_v62 = vpop.eup %2316  ;;  %v834_v19 = vadd.f32 1.0, %v2315_v3  ;;  %v802_v48 = vmul.f32 1.442695, %v742_v13  ;;  %v670_v7 = vadd.f32 %v669_v52, %v2886_v53  ;;  %v998_v28 = vpack.c.bf16 %v3107_v58, %v3105_v20 }
 0x1b1   : > { %v3112_v27 = vpop.f32.mrf.mxu0  ;;  %v926_v16 = vmul.f32 %v2317_v62, %v894_v18  ;;  %v705_v13 = vmax.f32 %v638_v37, 0.0  ;;  %v896_v29 = vsub.f32 %v704_v38, %v275_v57 }
 0x1b2   : > { %2330 = vrcp.f32 %v834_v19  ;;  %v743_v14 = vsub.f32 0.0, %v670_v7  ;;  %v644_v19 = vadd.f32 %v3055_v24, %v2908_v41  ;;  %v2482_v24 = vld [vmem:[%s2802_s8 + $0x60] sm:$0xff]  }
 0x1b3   : > { %v2319_v47 = vpop.eup %2318  ;;  %2332 = vpow2.f32 %v802_v48  ;;  %1219 = vmatmul.mubr.bf16.gmra.mxu1 %v998_v28  ;;  %v675_v44 = vpop.f32.mrf.mxu0  ;;  %v3124_v45 = vadd.f32 %v926_v16, %v273_v63  ;;  %v648_v28 = vadd.f32 %v3064_v59, %v2908_v41  ;;  %v277_v37 = vunpack.c.l.bf16 %v2482_v24 }
 0x1b4   : > { %v2321_v34 = vpop.eup %2320  ;;  %v835_v32 = vadd.f32 1.0, %v2319_v47  ;;  %v804_v1 = vmul.f32 1.442695, %v743_v14  ;;  %v676_v23 = vadd.f32 %v675_v44, %v2886_v53  ;;  %1228 = vmatprep.mubr.bf16.mxu1 %v2645_v0  ;;  %v897_v14 = vsub.f32 %v705_v13, %v276_v15 }
 0x1b5   : > { %v3121_v22 = vpop.f32.mrf.mxu0  ;;  %v927_v39 = vmul.f32 %v2321_v34, %v895_v30  ;;  %v706_v44 = vmax.f32 %v644_v19, 0.0  ;;  %v658_v19 = vadd.f32 %v3083_v12, %v2908_v41 }
 0x1b6   : > { %2334 = vrcp.f32 %v835_v32  ;;  %v744_v42 = vsub.f32 0.0, %v676_v23  ;;  %v278_v32 = vunpack.c.h.bf16 %v2482_v24 }
 0x1b7   : > { %v2323_v40 = vpop.eup %2322  ;;  %2336 = vpow2.f32 %v804_v1  ;;  %v679_v3 = vpop.f32.mrf.mxu0  ;;  %v3126_v52 = vadd.f32 %v927_v39, %v274_v43  ;;  %v707_v1 = vmax.f32 %v648_v28, 0.0 }
 0x1b8   : > { %v2325_v62 = vpop.eup %2324  ;;  %v836_v48 = vadd.f32 1.0, %v2323_v40  ;;  %v806_v7 = vmul.f32 1.442695, %v744_v42  ;;  %v680_v18 = vadd.f32 %v679_v3, %v2886_v53  ;;  %v898_v42 = vsub.f32 %v706_v44, %v277_v37 }
 0x1b9   : > { %v999_v9 = vpack.c.bf16 %v3126_v52, %v3124_v45  ;;  %v928_v47 = vmul.f32 %v2325_v62, %v896_v29  ;;  %v654_v40 = vadd.f32 %v3074_v25, %v2908_v41  ;;  %v899_v62 = vsub.f32 %v707_v1, %v278_v32 }
 0x1ba   : > { %2338 = vrcp.f32 %v836_v48  ;;  %v745_v63 = vsub.f32 0.0, %v680_v18  ;;  %v664_v44 = vadd.f32 %v3093_v26, %v2908_v41 }
 0x1bb   : > { %v2327_v43 = vpop.eup %2326  ;;  %2340 = vpow2.f32 %v806_v7  ;;  %1229 = vmatmul.mubr.bf16.gmra.mxu1 %v999_v9  ;;  %v3137_v23 = vadd.f32 %v928_v47, %v275_v57  ;;  %v708_v29 = vmax.f32 %v654_v40, 0.0 }
 0x1bc   : > { %v2329_v30 = vpop.eup %2328  ;;  %v837_v16 = vadd.f32 1.0, %v2327_v43  ;;  %v808_v53 = vmul.f32 1.442695, %v745_v63  ;;  %1238 = vmatprep.mubr.bf16.mxu1 %v2645_v0  ;;  %v709_v63 = vmax.f32 %v658_v19, 0.0  ;;  %v710_v40 = vmax.f32 %v664_v44, 0.0 }
 0x1bd   : > { %v929_v34 = vmul.f32 %v2329_v30, %v897_v14 }
 0x1be   : > { %2342 = vrcp.f32 %v837_v16 }
 0x1bf   : > { %v2331_v59 = vpop.eup %2330  ;;  %2344 = vpow2.f32 %v808_v53  ;;  %v3139_v38 = vadd.f32 %v929_v34, %v276_v15  ;;  %v2483_v15 = vld [vmem:[%s2802_s8 + $0x68] sm:$0xff]  }
 0x1c0   : > { %v2333_v39 = vpop.eup %2332  ;;  %v930_v48 = vmul.f32 %v2331_v59, %v898_v42  ;;  %v279_v18 = vunpack.c.l.bf16 %v2483_v15  ;;  %v280_v28 = vunpack.c.h.bf16 %v2483_v15 }
 0x1c1   : > { %v838_v13 = vadd.f32 1.0, %v2333_v39  ;;  %v1000_v3 = vpack.c.bf16 %v3139_v38, %v3137_v23  ;;  %v2484_v39 = vld [vmem:[%s2802_s8 + $0x70] sm:$0xff]  }
 0x1c2   : > { %v3149_v43 = vadd.f32 %v930_v48, %v277_v37  ;;  %v900_v30 = vsub.f32 %v708_v29, %v279_v18  ;;  %v901_v53 = vsub.f32 %v709_v63, %v280_v28  ;;  %v668_v37 = vadd.f32 %v3102_v21, %v2908_v41 }
 0x1c3   : > { %v2335_v7 = vpop.eup %2334  ;;  %2346 = vrcp.f32 %v838_v13  ;;  %1239 = vmatmul.mubr.bf16.gmra.mxu1 %v1000_v3  ;;  %v281_v42 = vunpack.c.l.bf16 %v2484_v39  ;;  %v678_v29 = vadd.f32 %v3121_v22, %v2908_v41 }
 0x1c4   : > { %v2337_v57 = vpop.eup %2336  ;;  %1248 = vmatprep.mubr.bf16.mxu1 %v2645_v0  ;;  %v931_v9 = vmul.f32 %v2335_v7, %v899_v62  ;;  %v282_v62 = vunpack.c.h.bf16 %v2484_v39  ;;  %v711_v19 = vmax.f32 %v668_v37, 0.0  ;;  %v988_v39 = vld [vmem:[#allocation7 + $0x2] sm:$0x3] }
 0x1c5   : > { %v839_v25 = vadd.f32 1.0, %v2337_v57  ;;  %v902_v7 = vsub.f32 %v710_v40, %v281_v42  ;;  %v674_v57 = vadd.f32 %v3112_v27, %v2908_v41 }
 0x1c6   : > { %v3151_v14 = vadd.f32 %v931_v9, %v278_v32  ;;  %v903_v15 = vsub.f32 %v711_v19, %v282_v62 }
 0x1c7   : > { %v2339_v47 = vpop.eup %2338  ;;  %2348 = vrcp.f32 %v839_v25  ;;  %v2485_v25 = vld [vmem:[%s2802_s8 + $0x78] sm:$0xff]   ;;  %v712_v63 = vmax.f32 %v674_v57, 0.0 }
 0x1c8   : > { %v2341_v12 = vpop.eup %2340  ;;  %v1001_v24 = vpack.c.bf16 %v3151_v14, %v3149_v43  ;;  %v932_v34 = vmul.f32 %v2339_v47, %v900_v30  ;;  %v713_v30 = vmax.f32 %v678_v29, 0.0 }
 0x1c9   : > { %v840_v16 = vadd.f32 1.0, %v2341_v12  ;;  %v284_v12 = vunpack.c.h.bf16 %v2485_v25 }
 0x1ca   : > { %v3161_v3 = vadd.f32 %v932_v34, %v279_v18 }
 0x1cb   : > { %v2343_v1 = vpop.eup %2342  ;;  %2350 = vrcp.f32 %v840_v16  ;;  %1249 = vmatmul.mubr.bf16.gmra.mxu1 %v1001_v24  ;;  %v905_v22 = vsub.f32 %v713_v30, %v284_v12 }
 0x1cc   : > { %v2345_v32 = vpop.eup %2344  ;;  %1258 = vmatprep.mubr.bf16.mxu1 %v2645_v0  ;;  %v933_v59 = vmul.f32 %v2343_v1, %v901_v53 }
 0x1cd   : > { %v841_v13 = vadd.f32 1.0, %v2345_v32 }
 0x1ce   : > { %v3163_v26 = vadd.f32 %v933_v59, %v280_v28  ;;  %v283_v28 = vunpack.c.l.bf16 %v2485_v25 }
 0x1cf   : > { %2352 = vrcp.f32 %v841_v13 }
 0x1d0   : > { %v2347_v48 = vpop.eup %2346  ;;  %v1002_v21 = vpack.c.bf16 %v3163_v26, %v3161_v3  ;;  %v904_v16 = vsub.f32 %v712_v63, %v283_v28 }
 0x1d1   : > { %v934_v18 = vmul.f32 %v2347_v48, %v902_v7 }
 0x1d3   : > { %1259 = vmatmul.mubr.bf16.gmra.mxu1 %v1002_v21  ;;  %v3173_v24 = vadd.f32 %v934_v18, %v281_v42  ;;  %v3188_v42 = vrot.slane %v988_v39, %v309_v51 }
 0x1d4   : > { %v2349_v9 = vpop.eup %2348  ;;  %1268 = vmatprep.mubr.bf16.mxu1 %v2645_v0 }
 0x1d5   : > { %v935_v47 = vmul.f32 %v2349_v9, %v903_v15 }
 0x1d7   : > { %v3175_v44 = vadd.f32 %v935_v47, %v282_v62 }
 0x1d8   : > { %v2351_v27 = vpop.eup %2350 }
 0x1d9   : > { %v1003_v41 = vpack.c.bf16 %v3175_v44, %v3173_v24  ;;  %v936_v53 = vmul.f32 %v2351_v27, %v904_v16 }
 0x1db   : > { %1269 = vmatmul.mubr.bf16.gmra.mxu1 %v1003_v41  ;;  %v3180_v37 = vadd.f32 %v936_v53, %v283_v28 }
 0x1dc   : > { %v2353_v34 = vpop.eup %2352  ;;  %1278 = vmatprep.mubr.bf16.mxu1 %v2645_v0 }
 0x1dd   : > { %v937_v1 = vmul.f32 %v2353_v34, %v905_v22 }
 0x1df   : > { %v3182_v32 = vadd.f32 %v937_v1, %v284_v12 }
 0x1e1   : > { %v1004_v59 = vpack.c.bf16 %v3182_v32, %v3180_v37 }
 0x1e3   : > { %1279 = vmatmul.mubr.bf16.gmra.mxu1 %v1004_v59 }
 0x22a   : > { %v1130_v40 = vpop.f32.mrf.mxu1 }
 0x22c   : > { %v1132_v13 = vpop.f32.mrf.mxu1 }
 0x22d   : > { %v1133_v62 = vadd.f32 %v1132_v13, %v3188_v42 }
 0x22e   : > { %v1134_v19 = vpop.f32.mrf.mxu1 }
 0x22f   : > { %v1321_v0 = vsub.f32 0.0, %v1133_v62 }
 0x230   : > { %v1136_v48 = vpop.f32.mrf.mxu1 }
 0x231   : > { %v1353_v21 = vmul.f32 1.442695, %v1321_v0  ;;  %v1137_v7 = vadd.f32 %v1136_v48, %v3188_v42 }
 0x232   : > { %v3192_v57 = vpop.f32.mrf.mxu1 }
 0x233   : > { %2354 = vpow2.f32 %v1353_v21  ;;  %v1322_v15 = vsub.f32 0.0, %v1137_v7 }
 0x234   : > { %v1142_v29 = vpop.f32.mrf.mxu1 }
 0x235   : > { %v1355_v18 = vmul.f32 1.442695, %v1322_v15  ;;  %v1143_v9 = vadd.f32 %v1142_v29, %v3188_v42  ;;  %v3208_v15 = vrot.slane %v988_v39, %v305_v33 }
 0x236   : > { %v3195_v51 = vpop.f32.mrf.mxu1 }
 0x237   : > { %2356 = vpow2.f32 %v1355_v18  ;;  %v1323_v25 = vsub.f32 0.0, %v1143_v9  ;;  %v1135_v33 = vadd.f32 %v1134_v19, %v3208_v15 }
 0x238   : > { %v1146_v28 = vpop.f32.mrf.mxu1 }
 0x239   : > { %v1357_v63 = vmul.f32 1.442695, %v1323_v25  ;;  %v1147_v47 = vadd.f32 %v1146_v28, %v3188_v42 }
 0x23b   : > { %v3198_v12 = vpop.f32.mrf.mxu1  ;;  %2358 = vpow2.f32 %v1357_v63  ;;  %v1324_v30 = vsub.f32 0.0, %v1147_v47 }
 0x23d   : > { %v1152_v27 = vpop.f32.mrf.mxu1  ;;  %v1359_v16 = vmul.f32 1.442695, %v1324_v30  ;;  %v1131_v30 = vadd.f32 %v1130_v40, %v3208_v15  ;;  %v1290_v40 = vmax.f32 %v1135_v33, 0.0 }
 0x23e   : > { %v1153_v41 = vadd.f32 %v1152_v27, %v3188_v42 }
 0x23f   : > { %v3201_v22 = vpop.f32.mrf.mxu1  ;;  %2360 = vpow2.f32 %v1359_v16 }
 0x240   : > { %v1325_v53 = vsub.f32 0.0, %v1153_v41  ;;  %v2355_v34 = vpop.eup %2354 }
 0x241   : > { %v1156_v1 = vpop.f32.mrf.mxu1  ;;  %v1417_v59 = vadd.f32 1.0, %v2355_v34 }
 0x242   : > { %v1361_v13 = vmul.f32 1.442695, %v1325_v53  ;;  %v1157_v62 = vadd.f32 %v1156_v1, %v3188_v42  ;;  %v1289_v1 = vmax.f32 %v1131_v30, 0.0 }
 0x243   : > { %v3204_v0 = vpop.f32.mrf.mxu1  ;;  %2362 = vrcp.f32 %v1417_v59 }
 0x244   : > { %v1326_v48 = vsub.f32 0.0, %v1157_v62  ;;  %v2357_v21 = vpop.eup %2356  ;;  %2364 = vpow2.f32 %v1361_v13  ;;  %v1481_v19 = vsub.f32 %v1289_v1, %v2934_v49 }
 0x245   : > { %v1162_v7 = vpop.f32.mrf.mxu1  ;;  %v1418_v29 = vadd.f32 1.0, %v2357_v21 }
 0x246   : > { %v1363_v18 = vmul.f32 1.442695, %v1326_v48  ;;  %v1163_v9 = vadd.f32 %v1162_v7, %v3188_v42 }
 0x247   : > { %v3211_v25 = vpop.f32.mrf.mxu1  ;;  %2366 = vrcp.f32 %v1418_v29 }
 0x248   : > { %v1327_v28 = vsub.f32 0.0, %v1163_v9  ;;  %v2359_v63 = vpop.eup %2358  ;;  %2368 = vpow2.f32 %v1363_v18  ;;  %v1141_v9 = vadd.f32 %v3192_v57, %v3208_v15 }
 0x249   : > { %v1166_v47 = vpop.f32.mrf.mxu1  ;;  %v1419_v27 = vadd.f32 1.0, %v2359_v63 }
 0x24a   : > { %v1365_v16 = vmul.f32 1.442695, %v1327_v28  ;;  %v1167_v41 = vadd.f32 %v1166_v47, %v3188_v42  ;;  %v1145_v47 = vadd.f32 %v3195_v51, %v3208_v15  ;;  %v1291_v57 = vmax.f32 %v1141_v9, 0.0 }
 0x24b   : > { %v3215_v50 = vpop.f32.mrf.mxu1  ;;  %2370 = vrcp.f32 %v1419_v27 }
 0x24c   : > { %v1328_v39 = vsub.f32 0.0, %v1167_v41  ;;  %v2361_v53 = vpop.eup %2360  ;;  %2372 = vpow2.f32 %v1365_v16  ;;  %v1482_v41 = vsub.f32 %v1290_v40, %v2936_v56  ;;  %v1483_v9 = vsub.f32 %v1291_v57, %v2953_v35 }
 0x24d   : > { %v1172_v34 = vpop.f32.mrf.mxu1  ;;  %v1420_v59 = vadd.f32 1.0, %v2361_v53 }
 0x24e   : > { %v1367_v13 = vmul.f32 1.442695, %v1328_v39  ;;  %v1173_v62 = vadd.f32 %v1172_v34, %v3188_v42 }
 0x24f   : > { %v3219_v48 = vpop.f32.mrf.mxu1  ;;  %2374 = vrcp.f32 %v1420_v59 }
 0x250   : > { %v1329_v21 = vsub.f32 0.0, %v1173_v62  ;;  %v2363_v7 = vpop.eup %2362  ;;  %2376 = vpow2.f32 %v1367_v13  ;;  %v1292_v62 = vmax.f32 %v1145_v47, 0.0  ;;  %v1151_v47 = vadd.f32 %v3198_v12, %v3208_v15 }
 0x251   : > { %v1176_v29 = vpop.f32.mrf.mxu1  ;;  %v2365_v18 = vpop.eup %2364  ;;  %v1513_v16 = vmul.f32 %v2363_v7, %v1481_v19 }
 0x252   : > { %v1369_v28 = vmul.f32 1.442695, %v1329_v21  ;;  %v1177_v63 = vadd.f32 %v1176_v29, %v3188_v42  ;;  %v1421_v30 = vadd.f32 1.0, %v2365_v18 }
 0x253   : > { %v3227_v27 = vpop.f32.mrf.mxu1  ;;  %v1545_v7 = vadd.f32 %v1513_v16, %v2934_v49  ;;  %v1155_v16 = vadd.f32 %v3201_v22, %v3208_v15 }
 0x254   : > { %2378 = vpow2.f32 %v1369_v28  ;;  %v1330_v33 = vsub.f32 0.0, %v1177_v63  ;;  %v2367_v39 = vpop.eup %2366 }
 0x255   : > { %2380 = vrcp.f32 %v1421_v30  ;;  %v1182_v53 = vpop.f32.mrf.mxu1  ;;  %v2369_v34 = vpop.eup %2368  ;;  %v1514_v1 = vmul.f32 %v2367_v39, %v1482_v41  ;;  %v1294_v22 = vmax.f32 %v1155_v16, 0.0 }
 0x256   : > { %v1371_v59 = vmul.f32 1.442695, %v1330_v33  ;;  %v1183_v13 = vadd.f32 %v1182_v53, %v3188_v42  ;;  %v1422_v21 = vadd.f32 1.0, %v2369_v34 }
 0x257   : > { %v3231_v51 = vpop.f32.mrf.mxu1  ;;  %v1546_v40 = vadd.f32 %v1514_v1, %v2936_v56  ;;  %v1484_v56 = vsub.f32 %v1292_v62, %v2955_v36 }
 0x258   : > { %2382 = vpow2.f32 %v1371_v59  ;;  %v1331_v29 = vsub.f32 0.0, %v1183_v13  ;;  %v2371_v18 = vpop.eup %2370  ;;  %v1293_v13 = vmax.f32 %v1151_v47, 0.0 }
 0x259   : > { %2384 = vrcp.f32 %v1422_v21  ;;  %v1186_v19 = vpop.f32.mrf.mxu1  ;;  %v2373_v28 = vpop.eup %2372  ;;  %v1978_v63 = vpack.c.bf16 %v1546_v40, %v1545_v7  ;;  %v1515_v49 = vmul.f32 %v2371_v18, %v1483_v9 }
 0x25a   : > { %v1373_v30 = vmul.f32 1.442695, %v1331_v29  ;;  %v1423_v41 = vadd.f32 1.0, %v2373_v28  ;;  %v1187_v33 = vadd.f32 %v1186_v19, %v3188_v42  ;;  %v1485_v47 = vsub.f32 %v1293_v13, %v2972_v8 }
 0x25b   : > { %v3239_v39 = vpop.f32.mrf.mxu1  ;;  %1979 = vst [vmem:[%s3243_s18] sm:$0xff] %v1978_v63   ;;  %v1547_v29 = vadd.f32 %v1515_v49, %v2953_v35 }
 0x25c   : > { %2386 = vpow2.f32 %v1373_v30  ;;  %v2375_v53 = vpop.eup %2374  ;;  %v1332_v12 = vsub.f32 0.0, %v1187_v33  ;;  %v1161_v33 = vadd.f32 %v3204_v0, %v3208_v15 }
 0x25d   : > { %2388 = vrcp.f32 %v1423_v41  ;;  %v1192_v34 = vpop.f32.mrf.mxu1  ;;  %v2377_v1 = vpop.eup %2376  ;;  %v1516_v57 = vmul.f32 %v2375_v53, %v1484_v56  ;;  %v1165_v53 = vadd.f32 %v3211_v25, %v3208_v15 }
 0x25e   : > { %v1193_v59 = vadd.f32 %v1192_v34, %v3188_v42  ;;  %v1424_v21 = vadd.f32 1.0, %v2377_v1  ;;  %v1375_v7 = vmul.f32 1.442695, %v1332_v12  ;;  %v1295_v13 = vmax.f32 %v1161_v33, 0.0 }
 0x25f   : > { %v3250_v40 = vpop.f32.mrf.mxu1  ;;  %v1548_v62 = vadd.f32 %v1516_v57, %v2955_v36  ;;  %v1486_v36 = vsub.f32 %v1294_v22, %v2974_v10 }
 0x260   : > { %v1333_v18 = vsub.f32 0.0, %v1193_v59  ;;  %2390 = vrcp.f32 %v1424_v21  ;;  %v1487_v33 = vsub.f32 %v1295_v13, %v2991_v60 }
 0x261   : > { %v2379_v19 = vpop.eup %2378  ;;  %v1196_v28 = vpop.f32.mrf.mxu1  ;;  %v1983_v9 = vpack.c.bf16 %v1548_v62, %v1547_v29  ;;  %2392 = vpow2.f32 %v1375_v7 }
 0x262   : > { %v2381_v63 = vpop.eup %2380  ;;  %v1425_v30 = vadd.f32 1.0, %v2379_v19  ;;  %v1377_v41 = vmul.f32 1.442695, %v1333_v18  ;;  %v1197_v35 = vadd.f32 %v1196_v28, %v3188_v42  ;;  %v1296_v18 = vmax.f32 %v1165_v53, 0.0 }
 0x263   : > { %v3258_v49 = vpop.f32.mrf.mxu1  ;;  %2055 = vst [vmem:[%s3243_s18 + $0x8] sm:$0xff] %v1983_v9   ;;  %v1517_v16 = vmul.f32 %v2381_v63, %v1485_v47  ;;  %v1171_v63 = vadd.f32 %v3215_v50, %v3208_v15 }
 0x264   : > { %2394 = vrcp.f32 %v1425_v30  ;;  %v1334_v12 = vsub.f32 0.0, %v1197_v35 }
 0x265   : > { %v2383_v56 = vpop.eup %2382  ;;  %2396 = vpow2.f32 %v1377_v41  ;;  %v1202_v34 = vpop.f32.mrf.mxu1  ;;  %v1549_v22 = vadd.f32 %v1517_v16, %v2972_v8  ;;  %v1175_v8 = vadd.f32 %v3219_v48, %v3208_v15  ;;  %v1297_v53 = vmax.f32 %v1171_v63, 0.0 }
 0x266   : > { %v2385_v1 = vpop.eup %2384  ;;  %v1426_v57 = vadd.f32 1.0, %v2383_v56  ;;  %v1203_v0 = vadd.f32 %v1202_v34, %v3188_v42  ;;  %v1379_v21 = vmul.f32 1.442695, %v1334_v12  ;;  %v1488_v56 = vsub.f32 %v1296_v18, %v2993_v61 }
 0x267   : > { %v1518_v59 = vmul.f32 %v2385_v1, %v1486_v36  ;;  %v3265_v7 = vpop.f32.mrf.mxu1  ;;  %v1489_v18 = vsub.f32 %v1297_v53, %v3010_v4 }
 0x268   : > { %2398 = vrcp.f32 %v1426_v57  ;;  %v1335_v29 = vsub.f32 0.0, %v1203_v0 }
 0x269   : > { %v2387_v62 = vpop.eup %2386  ;;  %v1550_v25 = vadd.f32 %v1518_v59, %v2974_v10  ;;  %2400 = vpow2.f32 %v1379_v21  ;;  %v1206_v19 = vpop.f32.mrf.mxu1  ;;  %v1298_v59 = vmax.f32 %v1175_v8, 0.0 }
 0x26a   : > { %v2389_v28 = vpop.eup %2388  ;;  %v1427_v9 = vadd.f32 1.0, %v2387_v62  ;;  %v1381_v30 = vmul.f32 1.442695, %v1335_v29  ;;  %v1207_v41 = vadd.f32 %v1206_v19, %v3188_v42 }
 0x26b   : > { %v1988_v47 = vpack.c.bf16 %v1550_v25, %v1549_v22  ;;  %v3273_v35 = vpop.f32.mrf.mxu1  ;;  %v1519_v36 = vmul.f32 %v2389_v28, %v1487_v33 }
 0x26c   : > { %2402 = vrcp.f32 %v1427_v9  ;;  %v1336_v10 = vsub.f32 0.0, %v1207_v41  ;;  %v1181_v9 = vadd.f32 %v3227_v27, %v3208_v15 }
 0x26d   : > { %2056 = vst [vmem:[%s3243_s18 + $0x10] sm:$0xff] %v1988_v47   ;;  %2404 = vpow2.f32 %v1381_v30  ;;  %v1212_v50 = vpop.f32.mrf.mxu1  ;;  %v2391_v16 = vpop.eup %2390  ;;  %v1551_v29 = vadd.f32 %v1519_v36, %v2991_v60  ;;  %v1490_v60 = vsub.f32 %v1298_v59, %v3012_v55 }
 0x26e   : > { %v1383_v12 = vmul.f32 1.442695, %v1336_v10  ;;  %v1213_v34 = vadd.f32 %v1212_v50, %v3188_v42  ;;  %v2393_v1 = vpop.eup %2392  ;;  %v1520_v57 = vmul.f32 %v2391_v16, %v1488_v56  ;;  %v1185_v56 = vadd.f32 %v3231_v51, %v3208_v15 }
 0x26f   : > { %v3280_v0 = vpop.f32.mrf.mxu1  ;;  %v1428_v13 = vadd.f32 1.0, %v2393_v1  ;;  %v1299_v16 = vmax.f32 %v1181_v9, 0.0 }
 0x270   : > { %2406 = vpow2.f32 %v1383_v12  ;;  %v1337_v48 = vsub.f32 0.0, %v1213_v34  ;;  %v1552_v62 = vadd.f32 %v1520_v57, %v2993_v61  ;;  %v1300_v51 = vmax.f32 %v1185_v56, 0.0 }
 0x271   : > { %v2395_v21 = vpop.eup %2394  ;;  %v1216_v22 = vpop.f32.mrf.mxu1  ;;  %2408 = vrcp.f32 %v1428_v13 }
 0x272   : > { %v2397_v25 = vpop.eup %2396  ;;  %v1385_v19 = vmul.f32 1.442695, %v1337_v48  ;;  %v1217_v28 = vadd.f32 %v1216_v22, %v3188_v42  ;;  %v1993_v63 = vpack.c.bf16 %v1552_v62, %v1551_v29  ;;  %v1521_v47 = vmul.f32 %v2395_v21, %v1489_v18 }
 0x273   : > { %v1429_v30 = vadd.f32 1.0, %v2397_v25  ;;  %v3288_v41 = vpop.f32.mrf.mxu1  ;;  %v1491_v22 = vsub.f32 %v1299_v16, %v3029_v31  ;;  %v1191_v25 = vadd.f32 %v3239_v39, %v3208_v15 }
 0x274   : > { %2410 = vpow2.f32 %v1385_v19  ;;  %v1338_v61 = vsub.f32 0.0, %v1217_v28  ;;  %2057 = vst [vmem:[%s3243_s18 + $0x18] sm:$0xff] %v1993_v63   ;;  %v1553_v34 = vadd.f32 %v1521_v47, %v3010_v4  ;;  %v1195_v63 = vadd.f32 %v3250_v40, %v3208_v15 }
 0x275   : > { %v2399_v33 = vpop.eup %2398  ;;  %2412 = vrcp.f32 %v1429_v30  ;;  %v1222_v8 = vpop.f32.mrf.mxu1  ;;  %v1492_v30 = vsub.f32 %v1300_v51, %v3031_v17  ;;  %v1201_v40 = vadd.f32 %v3258_v49, %v3208_v15 }
 0x276   : > { %v2401_v10 = vpop.eup %2400  ;;  %v1522_v36 = vmul.f32 %v2399_v33, %v1490_v60  ;;  %v1387_v50 = vmul.f32 1.442695, %v1338_v61  ;;  %v1223_v27 = vadd.f32 %v1222_v8, %v3188_v42  ;;  %v1301_v33 = vmax.f32 %v1191_v25, 0.0 }
 0x277   : > { %v1430_v53 = vadd.f32 1.0, %v2401_v10  ;;  %v3295_v12 = vpop.f32.mrf.mxu1 }
 0x278   : > { %v1554_v1 = vadd.f32 %v1522_v36, %v3012_v55  ;;  %2414 = vpow2.f32 %v1387_v50  ;;  %v1339_v57 = vsub.f32 0.0, %v1223_v27  ;;  %v1302_v27 = vmax.f32 %v1195_v63, 0.0 }
 0x279   : > { %v2403_v59 = vpop.eup %2402  ;;  %2416 = vrcp.f32 %v1430_v53  ;;  %v1226_v13 = vpop.f32.mrf.mxu1 }
 0x27a   : > { %v2405_v48 = vpop.eup %2404  ;;  %v1998_v21 = vpack.c.bf16 %v1554_v1, %v1553_v34  ;;  %v1389_v29 = vmul.f32 1.442695, %v1339_v57  ;;  %v1227_v62 = vadd.f32 %v1226_v13, %v3188_v42  ;;  %v1523_v28 = vmul.f32 %v2403_v59, %v1491_v22 }
 0x27b   : > { %v1431_v4 = vadd.f32 1.0, %v2405_v48  ;;  %v3303_v18 = vpop.f32.mrf.mxu1  ;;  %v1493_v13 = vsub.f32 %v1301_v33, %v3048_v6 }
 0x27c   : > { %2058 = vst [vmem:[%s3243_s18 + $0x20] sm:$0xff] %v1998_v21   ;;  %2418 = vpow2.f32 %v1389_v29  ;;  %v1340_v55 = vsub.f32 0.0, %v1227_v62  ;;  %v1555_v50 = vadd.f32 %v1523_v28, %v3029_v31  ;;  %v1205_v31 = vadd.f32 %v3265_v7, %v3208_v15 }
 0x27d   : > { %v2407_v19 = vpop.eup %2406  ;;  %2420 = vrcp.f32 %v1431_v4  ;;  %v1232_v9 = vpop.f32.mrf.mxu1  ;;  %v1494_v62 = vsub.f32 %v1302_v27, %v3050_v11 }
 0x27e   : > { %v1432_v47 = vadd.f32 1.0, %v2407_v19  ;;  %v1391_v60 = vmul.f32 1.442695, %v1340_v55  ;;  %v1233_v61 = vadd.f32 %v1232_v9, %v3188_v42  ;;  %v2409_v39 = vpop.eup %2408  ;;  %v1304_v9 = vmax.f32 %v1205_v31, 0.0 }
 0x27f   : > { %v3310_v8 = vpop.f32.mrf.mxu1  ;;  %v1524_v10 = vmul.f32 %v2409_v39, %v1492_v30 }
 0x280   : > { %2422 = vrcp.f32 %v1432_v47  ;;  %v1341_v36 = vsub.f32 0.0, %v1233_v61 }
 0x281   : > { %v2411_v56 = vpop.eup %2410  ;;  %2424 = vpow2.f32 %v1391_v60  ;;  %v1236_v16 = vpop.f32.mrf.mxu1  ;;  %v1556_v34 = vadd.f32 %v1524_v10, %v3031_v17  ;;  %v1303_v17 = vmax.f32 %v1201_v40, 0.0  ;;  %v1211_v10 = vadd.f32 %v3273_v35, %v3208_v15 }
 0x282   : > { %v2413_v53 = vpop.eup %2412  ;;  %v1433_v1 = vadd.f32 1.0, %v2411_v56  ;;  %v1393_v57 = vmul.f32 1.442695, %v1341_v36  ;;  %v1237_v59 = vadd.f32 %v1236_v16, %v3188_v42  ;;  %v1215_v40 = vadd.f32 %v3280_v0, %v3208_v15 }
 0x283   : > { %v3318_v48 = vpop.f32.mrf.mxu1  ;;  %v2003_v21 = vpack.c.bf16 %v1556_v34, %v1555_v50  ;;  %v1525_v29 = vmul.f32 %v2413_v53, %v1493_v13  ;;  %v1495_v61 = vsub.f32 %v1303_v17, %v3067_v54  ;;  %v1496_v16 = vsub.f32 %v1304_v9, %v3069_v5 }
 0x284   : > { %2426 = vrcp.f32 %v1433_v1  ;;  %v1342_v49 = vsub.f32 0.0, %v1237_v59  ;;  %v1305_v59 = vmax.f32 %v1211_v10, 0.0  ;;  %v1306_v31 = vmax.f32 %v1215_v40, 0.0 }
 0x285   : > { %v2415_v51 = vpop.eup %2414  ;;  %2428 = vpow2.f32 %v1393_v57  ;;  %v1242_v22 = vpop.f32.mrf.mxu1  ;;  %2059 = vst [vmem:[%s3243_s18 + $0x28] sm:$0xff] %v2003_v21   ;;  %v1557_v47 = vadd.f32 %v1525_v29, %v3048_v6  ;;  %v1221_v9 = vadd.f32 %v3288_v41, %v3208_v15 }
 0x286   : > { %v2417_v25 = vpop.eup %2416  ;;  %v1434_v4 = vadd.f32 1.0, %v2415_v51  ;;  %v1395_v55 = vmul.f32 1.442695, %v1342_v49  ;;  %v1243_v19 = vadd.f32 %v1242_v22, %v3188_v42 }
 0x287   : > { %v1526_v28 = vmul.f32 %v2417_v25, %v1494_v62  ;;  %v3325_v63 = vpop.f32.mrf.mxu1 }
 0x288   : > { %2430 = vrcp.f32 %v1434_v4  ;;  %v1343_v7 = vsub.f32 0.0, %v1243_v19 }
 0x289   : > { %v2419_v30 = vpop.eup %2418  ;;  %v1558_v60 = vadd.f32 %v1526_v28, %v3050_v11  ;;  %2432 = vpow2.f32 %v1395_v55  ;;  %v1246_v39 = vpop.f32.mrf.mxu1  ;;  %v1497_v55 = vsub.f32 %v1305_v59, %v3086_v2 }
 0x28a   : > { %v2421_v33 = vpop.eup %2420  ;;  %v1435_v36 = vadd.f32 1.0, %v2419_v30  ;;  %v1397_v56 = vmul.f32 1.442695, %v1343_v7  ;;  %v1247_v50 = vadd.f32 %v1246_v39, %v3188_v42 }
 0x28b   : > { %v2008_v27 = vpack.c.bf16 %v1558_v60, %v1557_v47  ;;  %v3335_v6 = vpop.f32.mrf.mxu1  ;;  %v1527_v11 = vmul.f32 %v2421_v33, %v1495_v61  ;;  %v1225_v61 = vadd.f32 %v3295_v12, %v3208_v15 }
 0x28c   : > { %2434 = vrcp.f32 %v1435_v36  ;;  %v1344_v53 = vsub.f32 0.0, %v1247_v50 }
 0x28d   : > { %v2423_v34 = vpop.eup %2422  ;;  %2060 = vst [vmem:[%s3243_s18 + $0x30] sm:$0xff] %v2008_v27   ;;  %2436 = vpow2.f32 %v1397_v56  ;;  %v1252_v1 = vpop.f32.mrf.mxu1  ;;  %v1559_v51 = vadd.f32 %v1527_v11, %v3067_v54  ;;  %v1307_v56 = vmax.f32 %v1221_v9, 0.0  ;;  %v1308_v12 = vmax.f32 %v1225_v61, 0.0 }
 0x28e   : > { %v2425_v35 = vpop.eup %2424  ;;  %v1528_v57 = vmul.f32 %v2423_v34, %v1496_v16  ;;  %v1399_v13 = vmul.f32 1.442695, %v1344_v53  ;;  %v1253_v21 = vadd.f32 %v1252_v1, %v3188_v42 }
 0x28f   : > { %v1436_v49 = vadd.f32 1.0, %v2425_v35  ;;  %v3340_v0 = vpop.f32.mrf.mxu1 }
 0x290   : > { %v1560_v29 = vadd.f32 %v1528_v57, %v3069_v5  ;;  %2438 = vpow2.f32 %v1399_v13  ;;  %v1345_v62 = vsub.f32 0.0, %v1253_v21  ;;  %v1498_v5 = vsub.f32 %v1306_v31, %v3088_v46 }
 0x291   : > { %v2427_v17 = vpop.eup %2426  ;;  %2440 = vrcp.f32 %v1436_v49  ;;  %v1256_v22 = vpop.f32.mrf.mxu1  ;;  %v1499_v13 = vsub.f32 %v1307_v56, %v3105_v20  ;;  %v1231_v21 = vadd.f32 %v3303_v18, %v3208_v15  ;;  %v1245_v56 = vadd.f32 %v3325_v63, %v3208_v15 }
 0x292   : > { %v2429_v25 = vpop.eup %2428  ;;  %v2013_v4 = vpack.c.bf16 %v1560_v29, %v1559_v51  ;;  %v1401_v19 = vmul.f32 1.442695, %v1345_v62  ;;  %v1257_v28 = vadd.f32 %v1256_v22, %v3188_v42  ;;  %v1529_v54 = vmul.f32 %v2427_v17, %v1497_v55 }
 0x293   : > { %v1437_v7 = vadd.f32 1.0, %v2429_v25  ;;  %v3348_v30 = vpop.f32.mrf.mxu1  ;;  %v1500_v62 = vsub.f32 %v1308_v12, %v3107_v58 }
 0x294   : > { %2061 = vst [vmem:[%s3243_s18 + $0x38] sm:$0xff] %v2013_v4   ;;  %2442 = vpow2.f32 %v1401_v19  ;;  %v1346_v47 = vsub.f32 0.0, %v1257_v28  ;;  %v1561_v40 = vadd.f32 %v1529_v54, %v3086_v2  ;;  %v1309_v19 = vmax.f32 %v1231_v21, 0.0 }
 0x295   : > { %v2431_v60 = vpop.eup %2430  ;;  %2444 = vrcp.f32 %v1437_v7  ;;  %v1262_v39 = vpop.f32.mrf.mxu1 }
 0x296   : > { %v2433_v33 = vpop.eup %2432  ;;  %v1530_v10 = vmul.f32 %v2431_v60, %v1498_v5  ;;  %v1403_v36 = vmul.f32 1.442695, %v1346_v47  ;;  %v1263_v41 = vadd.f32 %v1262_v39, %v3188_v42  ;;  %v1241_v47 = vadd.f32 %v3318_v48, %v3208_v15 }
 0x297   : > { %v1438_v50 = vadd.f32 1.0, %v2433_v33  ;;  %v3355_v27 = vpop.f32.mrf.mxu1 }
 0x298   : > { %v1562_v11 = vadd.f32 %v1530_v10, %v3088_v46  ;;  %2446 = vpow2.f32 %v1403_v36  ;;  %v1347_v16 = vsub.f32 0.0, %v1263_v41  ;;  %v1235_v46 = vadd.f32 %v3310_v8, %v3208_v15 }
 0x299   : > { %v2435_v53 = vpop.eup %2434  ;;  %2448 = vrcp.f32 %v1438_v50  ;;  %v1266_v34 = vpop.f32.mrf.mxu1  ;;  %v1501_v41 = vsub.f32 %v1309_v19, %v3124_v45 }
 0x29a   : > { %v2437_v1 = vpop.eup %2436  ;;  %v2018_v35 = vpack.c.bf16 %v1562_v11, %v1561_v40  ;;  %v1405_v57 = vmul.f32 1.442695, %v1347_v16  ;;  %v1267_v59 = vadd.f32 %v1266_v34, %v3188_v42  ;;  %v1531_v29 = vmul.f32 %v2435_v53, %v1499_v13 }
 0x29b   : > { %v1439_v2 = vadd.f32 1.0, %v2437_v1  ;;  %v3363_v31 = vpop.f32.mrf.mxu1  ;;  %v1310_v9 = vmax.f32 %v1235_v46, 0.0  ;;  %v1311_v11 = vmax.f32 %v1241_v47, 0.0 }
 0x29c   : > { %2062 = vst [vmem:[%s3243_s18 + $0x40] sm:$0xff] %v2018_v35   ;;  %2450 = vpow2.f32 %v1405_v57  ;;  %v1348_v49 = vsub.f32 0.0, %v1267_v59  ;;  %v1563_v54 = vadd.f32 %v1531_v29, %v3105_v20  ;;  %v1312_v57 = vmax.f32 %v1245_v56, 0.0 }
 0x29d   : > { %v2439_v51 = vpop.eup %2438  ;;  %2452 = vrcp.f32 %v1439_v2  ;;  %v1272_v17 = vpop.f32.mrf.mxu1  ;;  %v1502_v40 = vsub.f32 %v1310_v9, %v3126_v52  ;;  %v1503_v46 = vsub.f32 %v1311_v11, %v3137_v23  ;;  %v1251_v29 = vadd.f32 %v3335_v6, %v3208_v15 }
 0x29e   : > { %v2441_v22 = vpop.eup %2440  ;;  %v1440_v25 = vadd.f32 1.0, %v2439_v51  ;;  %v1407_v4 = vmul.f32 1.442695, %v1348_v49  ;;  %v1273_v18 = vadd.f32 %v1272_v17, %v3188_v42 }
 0x29f   : > { %v1532_v55 = vmul.f32 %v2441_v22, %v1500_v62  ;;  %v3370_v28 = vpop.f32.mrf.mxu1  ;;  %v1313_v6 = vmax.f32 %v1251_v29, 0.0 }
 0x2a0   : > { %2454 = vrcp.f32 %v1440_v25  ;;  %v1349_v8 = vsub.f32 0.0, %v1273_v18 }
 0x2a1   : > { %v2443_v7 = vpop.eup %2442  ;;  %v1564_v5 = vadd.f32 %v1532_v55, %v3107_v58  ;;  %2456 = vpow2.f32 %v1407_v4  ;;  %v1276_v60 = vpop.f32.mrf.mxu1  ;;  %v1504_v4 = vsub.f32 %v1312_v57, %v3139_v38 }
 0x2a2   : > { %v2445_v61 = vpop.eup %2444  ;;  %v1441_v39 = vadd.f32 1.0, %v2443_v7  ;;  %v1409_v33 = vmul.f32 1.442695, %v1349_v8  ;;  %v1277_v10 = vadd.f32 %v1276_v60, %v3188_v42 }
 0x2a3   : > { %v2023_v36 = vpack.c.bf16 %v1564_v5, %v1563_v54  ;;  %v3380_v20 = vpop.f32.mrf.mxu1  ;;  %v1533_v48 = vmul.f32 %v2445_v61, %v1501_v41  ;;  %v1505_v61 = vsub.f32 %v1313_v6, %v3149_v43 }
 0x2a4   : > { %2458 = vrcp.f32 %v1441_v39  ;;  %v1350_v58 = vsub.f32 0.0, %v1277_v10  ;;  %v1261_v39 = vadd.f32 %v3348_v30, %v3208_v15 }
 0x2a5   : > { %v2447_v50 = vpop.eup %2446  ;;  %2063 = vst [vmem:[%s3243_s18 + $0x48] sm:$0xff] %v2023_v36   ;;  %2460 = vpow2.f32 %v1409_v33  ;;  %v1282_v16 = vpop.f32.mrf.mxu1  ;;  %v1565_v21 = vadd.f32 %v1533_v48, %v3124_v45  ;;  %v1255_v45 = vadd.f32 %v3340_v0, %v3208_v15 }
 0x2a6   : > { %v2449_v53 = vpop.eup %2448  ;;  %v1442_v12 = vadd.f32 1.0, %v2447_v50  ;;  %v1411_v34 = vmul.f32 1.442695, %v1350_v58  ;;  %v1283_v1 = vadd.f32 %v1282_v16, %v3188_v42  ;;  %v1315_v58 = vmax.f32 %v1261_v39, 0.0 }
 0x2a7   : > { %v1534_v35 = vmul.f32 %v2449_v53, %v1502_v40  ;;  %v3385_v63 = vpop.f32.mrf.mxu1  ;;  %v1314_v5 = vmax.f32 %v1255_v45, 0.0 }
 0x2a8   : > { %2462 = vrcp.f32 %v1442_v12  ;;  %v1351_v59 = vsub.f32 0.0, %v1283_v1  ;;  %v1507_v12 = vsub.f32 %v1315_v58, %v3161_v3 }
 0x2a9   : > { %v2451_v13 = vpop.eup %2450  ;;  %v1566_v2 = vadd.f32 %v1534_v35, %v3126_v52  ;;  %2464 = vpow2.f32 %v1411_v34  ;;  %v1286_v49 = vpop.f32.mrf.mxu1  ;;  %v1506_v36 = vsub.f32 %v1314_v5, %v3151_v14 }
 0x2aa   : > { %v2453_v51 = vpop.eup %2452  ;;  %v1443_v62 = vadd.f32 1.0, %v2451_v13  ;;  %v1413_v17 = vmul.f32 1.442695, %v1351_v59  ;;  %v1287_v22 = vadd.f32 %v1286_v49, %v3188_v42 }
 0x2ab   : > { %v2028_v25 = vpack.c.bf16 %v1566_v2, %v1565_v21  ;;  %v1535_v18 = vmul.f32 %v2453_v51, %v1503_v46  ;;  %v1281_v51 = vadd.f32 %v3380_v20, %v3208_v15 }
 0x2ac   : > { %2466 = vrcp.f32 %v1443_v62  ;;  %v1352_v52 = vsub.f32 0.0, %v1287_v22 }
 0x2ad   : > { %v2455_v55 = vpop.eup %2454  ;;  %2064 = vst [vmem:[%s3243_s18 + $0x50] sm:$0xff] %v2028_v25   ;;  %2468 = vpow2.f32 %v1413_v17  ;;  %v1567_v42 = vadd.f32 %v1535_v18, %v3137_v23  ;;  %v1265_v23 = vadd.f32 %v3355_v27, %v3208_v15  ;;  %v1271_v27 = vadd.f32 %v3363_v31, %v3208_v15 }
 0x2ae   : > { %v2457_v19 = vpop.eup %2456  ;;  %v1536_v9 = vmul.f32 %v2455_v55, %v1504_v4  ;;  %v1415_v8 = vmul.f32 1.442695, %v1352_v52 }
 0x2af   : > { %v1444_v7 = vadd.f32 1.0, %v2457_v19  ;;  %v1316_v11 = vmax.f32 %v1265_v23, 0.0  ;;  %v1317_v21 = vmax.f32 %v1271_v27, 0.0 }
 0x2b0   : > { %v1568_v54 = vadd.f32 %v1536_v9, %v3139_v38  ;;  %2470 = vpow2.f32 %v1415_v8 }
 0x2b1   : > { %v2459_v47 = vpop.eup %2458  ;;  %2472 = vrcp.f32 %v1444_v7  ;;  %v1508_v57 = vsub.f32 %v1316_v11, %v3163_v26  ;;  %v1509_v62 = vsub.f32 %v1317_v21, %v3173_v24 }
 0x2b2   : > { %v2461_v0 = vpop.eup %2460  ;;  %v2033_v60 = vpack.c.bf16 %v1568_v54, %v1567_v42  ;;  %v1537_v10 = vmul.f32 %v2459_v47, %v1505_v61 }
 0x2b3   : > { %v1445_v33 = vadd.f32 1.0, %v2461_v0 }
 0x2b4   : > { %2065 = vst [vmem:[%s3243_s18 + $0x58] sm:$0xff] %v2033_v60   ;;  %v1569_v48 = vadd.f32 %v1537_v10, %v3149_v43  ;;  %v1275_v43 = vadd.f32 %v3370_v28, %v3208_v15  ;;  %v1285_v28 = vadd.f32 %v3385_v63, %v3208_v15 }
 0x2b5   : > { %v2463_v41 = vpop.eup %2462  ;;  %2474 = vrcp.f32 %v1445_v33 }
 0x2b6   : > { %v2465_v38 = vpop.eup %2464  ;;  %v1538_v56 = vmul.f32 %v2463_v41, %v1506_v36  ;;  %v1318_v46 = vmax.f32 %v1275_v43, 0.0  ;;  %v1320_v4 = vmax.f32 %v1285_v28, 0.0 }
 0x2b7   : > { %v1446_v50 = vadd.f32 1.0, %v2465_v38 }
 0x2b8   : > { %v1570_v40 = vadd.f32 %v1538_v56, %v3151_v14  ;;  %v1510_v22 = vsub.f32 %v1318_v46, %v3175_v44  ;;  %v1512_v55 = vsub.f32 %v1320_v4, %v3182_v32 }
 0x2b9   : > { %v2467_v30 = vpop.eup %2466  ;;  %2476 = vrcp.f32 %v1446_v50 }
 0x2ba   : > { %v2469_v16 = vpop.eup %2468  ;;  %v2038_v53 = vpack.c.bf16 %v1570_v40, %v1569_v48  ;;  %v1539_v35 = vmul.f32 %v2467_v30, %v1507_v12 }
 0x2bb   : > { %v1447_v34 = vadd.f32 1.0, %v2469_v16 }
 0x2bc   : > { %2066 = vst [vmem:[%s3243_s18 + $0x60] sm:$0xff] %v2038_v53   ;;  %v1571_v2 = vadd.f32 %v1539_v35, %v3161_v3 }
 0x2bd   : > { %v2471_v1 = vpop.eup %2470  ;;  %2478 = vrcp.f32 %v1447_v34 }
 0x2be   : > { %v2473_v14 = vpop.eup %2472  ;;  %v1448_v59 = vadd.f32 1.0, %v2471_v1 }
 0x2bf   : > { %v1540_v13 = vmul.f32 %v2473_v14, %v1508_v57 }
 0x2c0   : > { %2480 = vrcp.f32 %v1448_v59 }
 0x2c1   : > { %v1572_v31 = vadd.f32 %v1540_v13, %v3163_v26  ;;  %v1319_v26 = vmax.f32 %v1281_v51, 0.0 }
 0x2c2   : > { %v2475_v49 = vpop.eup %2474 }
 0x2c3   : > { %v2043_v29 = vpack.c.bf16 %v1572_v31, %v1571_v2  ;;  %v1541_v17 = vmul.f32 %v2475_v49, %v1509_v62  ;;  %v1511_v15 = vsub.f32 %v1319_v26, %v3180_v37 }
 0x2c5   : > { %2067 = vst [vmem:[%s3243_s18 + $0x68] sm:$0xff] %v2043_v29   ;;  %v1573_v18 = vadd.f32 %v1541_v17, %v3173_v24 }
 0x2c6   : > { %v2477_v3 = vpop.eup %2476 }
 0x2c7   : > { %v1542_v25 = vmul.f32 %v2477_v3, %v1510_v22 }
 0x2c9   : > { %v1574_v20 = vadd.f32 %v1542_v25, %v3175_v44 }
 0x2ca   : > { %v2479_v45 = vpop.eup %2478 }
 0x2cb   : > { %v2048_v63 = vpack.c.bf16 %v1574_v20, %v1573_v18  ;;  %v1543_v52 = vmul.f32 %v2479_v45, %v1511_v15 }
 0x2cd   : > { %v2481_v19 = vpop.eup %2480  ;;  %2068 = vst [vmem:[%s3243_s18 + $0x70] sm:$0xff] %v2048_v63   ;;  %v1575_v6 = vadd.f32 %v1543_v52, %v3180_v37 }
 0x2ce   : > { %v1544_v9 = vmul.f32 %v2481_v19, %v1512_v55 }
 0x2d0   : > { %v1576_v24 = vadd.f32 %v1544_v9, %v3182_v32 }
 0x2d2   : > { %v2053_v44 = vpack.c.bf16 %v1576_v24, %v1575_v6 }
 0x2d4   : > { %2069 = vst [vmem:[%s3243_s18 + $0x78] sm:$0xff] %v2053_v44  }
 0x2d5   : > { %2579 = shalt.err (!%p2576_p9)
}
 0x2d6   : > { %s2580_s24 = scalar_lea.hbm %s3436_s4, 2048  ;;  %s2584_s28 = scalar_lea.hbm %s3485_s3, 4096 }
 0x2d7   : > { %p2581_p13 = scmp.ne.s32.totalorder %s3436_s4, %s2580_s24  ;;  %p2585_p4 = scmp.lt.s32.totalorder %s3436_s4, %s3485_s3 }
 0x2d8   : > { %p2586_p8 = scmp.lt.s32.totalorder %s2584_s28, %s2580_s24 }
 0x2d9   : > { %p2582_p5 = pnand %p2581_p13, %p3501_p10 }
 0x2da   : > { %p2587_p7 = por %p2586_p8, %p2585_p4 }
 0x2db   : > { %p2583_p0 = pneg %p2582_p5 }
 0x2dd   : > { %p2588_p11 = pnand %p2587_p7, %p2583_p0 }
 0x2df   : > { %2591 = shalt.err (!%p2588_p11)
}
 0x2e0   : > { %s2647_s8 = smov 64   ;;  %s2648_s18 = smov 4  }
 0x2e1   : > { %2080 = dma.vmem_to_hbm [thread:$0]  (%p3501_p10), %s3438_s27, 2048, %s3436_s4, %s1738_s10, %s2647_s8, %s2647_s8, %s2648_s18  }
 0x2e2 PF: > { %s1766_s20 = sand.u32 1, %s2622_s12   ;;  %p3502_p1 = scmp.ne.s32.totalorder %s3491_s19, 0 }
 0x2e3   : > { %p3503_p2 = scmp.ge.s32.totalorder %s2634_s15, 2  ;;  %s1767_s29 = scalar_lea.sflag [#allocation4], %s1766_s20 }
 0x2e5   : > { %p2094_p6 = pnand %p3503_p2, %p3502_p1 }
 0x2e7   : > { %p2095_p12 = pneg %p2094_p6 }
 0x2e9   : > { %2617 = dma.done.wait (%p2095_p12), %s1767_s29, 2048  }
 0x2ea   : > { %2619 = vsyncadd (%p2095_p12), %s1767_s29, 4294965248  ;;  %p17_p3 = scmp.ge.s32.totalorder %s2741_s9, 4   ;;  %s3504_s12 = smov %s2626_s13 }
 0x2eb   : > { %s3505_s13 = smov %s2630_s14  ;;  %s3506_s14 = smov %s2750_s17 }
 0x2ec   : > { %s3507_s15 = smov %s2741_s9  ;;  %19 = sbr.rel (!%p17_p3) target bundleno = 6 (0x6), region = 87 }
 0x2f1   :  { %1772 = vsyncpa [#allocation3], 1 }
 0x2f2   :  { %1774 = vsyncpa [#allocation3 + $0x1], 1 }
 0x2f3   :  { %1775 = vsyncpa [#allocation6], 1 }
 0x2f4   :  { %1776 = vsyncpa [#allocation4], 1 }
 0x2f5   :  { %1778 = vsyncpa [#allocation4 + $0x1], 1 }

</bundles_post_ra>
